<compile_context>
chip_gen: v7x
topology: tpu7x:2x2x1
jax: 0.10.0
libtpu: 0.0.40
codegen_flags: <defaults>
</compile_context>

<pallas_src>
import functools

import jax
import jax.numpy as jnp
from jax.experimental import pallas as pl
from jax.experimental.pallas import tpu as pltpu


# ------------------------- conv matmul kernel ------------------------------

def _conv_mm_relu_kernel(p_ref, w_ref, b_ref, o_ref):
    # o = relu(patches @ w + b), M tiled over the grid.
    y = jnp.dot(p_ref[...], w_ref[...], preferred_element_type=jnp.float32)
    o_ref[...] = jnp.maximum(y + b_ref[...], 0.0).astype(o_ref.dtype)


def conv3x3_relu_nhwc(image_nchw, w_mat, b_conv, *, tm=128):
    """Conv2d(3->32, k=3, s=1, p=1) + ReLU, output flattened in NHWC order.

    im2col (pure index shuffling) is done in plain JAX; the matmul + fused
    ReLU runs in a Pallas kernel with the M = B*H*W axis tiled ("parallel").
    """
    B, C, H, W = image_nchw.shape
    C_out = w_mat.shape[1]
    img = jnp.transpose(image_nchw, (0, 2, 3, 1))                   # NHWC
    pad = jnp.pad(img, ((0, 0), (1, 1), (1, 1), (0, 0)))
    # patch feature index = c*9 + kh*3 + kw  (matches OIHW weight reshape)
    patches = jnp.stack(
        [pad[:, kh:kh + H, kw:kw + W, :] for kh in range(3) for kw in range(3)],
        axis=-1,
    ).reshape(B * H * W, C * 9)

    M = B * H * W
    tm = min(tm, M)
    assert M % tm == 0, (M, tm)

    out = pl.pallas_call(
        _conv_mm_relu_kernel,
        out_shape=jax.ShapeDtypeStruct((M, C_out), jnp.float32),
        grid_spec=pltpu.PrefetchScalarGridSpec(
            num_scalar_prefetch=0,
            grid=(M // tm,),
            in_specs=[
                pl.BlockSpec((tm, C * 9), lambda i: (i, 0)),
                pl.BlockSpec((C * 9, C_out), lambda i: (0, 0)),
                pl.BlockSpec((1, C_out), lambda i: (0, 0)),
            ],
            out_specs=pl.BlockSpec((tm, C_out), lambda i: (i, 0)),
        ),
        compiler_params=pltpu.CompilerParams(
            dimension_semantics=("parallel",)),
    )(patches, w_mat, b_conv.reshape(1, C_out))
    # row order is (b, h, w) -> per-sample NHWC flatten: h*W*C + w*C + c
    return out.reshape(B, H * W * C_out)


# ------------------------ fused MLP (fc1..heads) ----------------------------

def _fused_mlp_kernel(x_ref, w1_ref, state_ref, w1s_ref, b1_ref,
                      w2_ref, b2_ref, wh_ref, bh_ref,
                      o_ref, acc_ref, *, cont_dim):
    k = pl.program_id(0)

    @pl.when(k == 0)
    def _():
        acc_ref[...] = jnp.zeros_like(acc_ref)

    # Streamed fc1 partial: acc += x_tile @ w1_tile   (K-gridded)
    acc_ref[...] += jnp.dot(x_ref[...], w1_ref[...],
                            preferred_element_type=jnp.float32)

    @pl.when(k == pl.num_programs(0) - 1)
    def _():
        # fc1 epilogue: add the small state contribution + bias, ReLU.
        h1 = acc_ref[...] + jnp.dot(state_ref[...], w1s_ref[...],
                                    preferred_element_type=jnp.float32)
        h1 = jnp.maximum(h1 + b1_ref[...], 0.0)
        # fc2 + ReLU, fully in VMEM.
        h2 = jnp.dot(h1, w2_ref[...], preferred_element_type=jnp.float32)
        h2 = jnp.maximum(h2 + b2_ref[...], 0.0)
        # Fused heads: one lane-dense 128-wide matmul; tanh on the first
        # cont_dim columns (continuous head), sigmoid on the rest (discrete
        # head + zero padding, sliced off in the wrapper).
        y = jnp.dot(h2, wh_ref[...], preferred_element_type=jnp.float32)
        y = y + bh_ref[...]
        col = jax.lax.broadcasted_iota(jnp.int32, y.shape, 1)
        y = jnp.where(col < cont_dim, jnp.tanh(y), jax.nn.sigmoid(y))
        o_ref[...] = y.astype(o_ref.dtype)


def fused_mlp(x_img, state, kp, *, cont_dim, disc_dim, block_k=2048):
    """fc1 -> relu -> fc2 -> relu -> {tanh, sigmoid} heads in one pallas_call."""
    B, K_img = x_img.shape
    d1 = kp["w1_img"].shape[1]          # 128
    d2 = kp["w2"].shape[1]              # 64
    s_dim = state.shape[1]              # 9
    n_head_pad = kp["w_heads"].shape[1]  # 128 (lane-dense)

    # Pad batch to a full sublane group.
    Bp = max(8, ((B + 7) // 8) * 8)
    if Bp != B:
        x_img = jnp.pad(x_img, ((0, Bp - B), (0, 0)))
        state = jnp.pad(state, ((0, Bp - B), (0, 0)))

    tk = min(block_k, K_img)
    assert K_img % tk == 0, (K_img, tk)

    out = pl.pallas_call(
        functools.partial(_fused_mlp_kernel, cont_dim=cont_dim),
        out_shape=jax.ShapeDtypeStruct((Bp, n_head_pad), jnp.float32),
        grid_spec=pltpu.PrefetchScalarGridSpec(
            num_scalar_prefetch=0,
            grid=(K_img // tk,),
            in_specs=[
                pl.BlockSpec((Bp, tk), lambda k: (0, k)),          # x image feats
                pl.BlockSpec((tk, d1), lambda k: (k, 0)),          # w_fc1 (image rows)
                pl.BlockSpec((Bp, s_dim), lambda k: (0, 0)),       # state
                pl.BlockSpec((s_dim, d1), lambda k: (0, 0)),       # w_fc1 (state rows)
                pl.BlockSpec((1, d1), lambda k: (0, 0)),           # b_fc1
                pl.BlockSpec((d1, d2), lambda k: (0, 0)),          # w_fc2
                pl.BlockSpec((1, d2), lambda k: (0, 0)),           # b_fc2
                pl.BlockSpec((d2, n_head_pad), lambda k: (0, 0)),  # fused head W
                pl.BlockSpec((1, n_head_pad), lambda k: (0, 0)),   # fused head b
            ],
            out_specs=pl.BlockSpec((Bp, n_head_pad), lambda k: (0, 0)),
            scratch_shapes=[pltpu.VMEM((Bp, d1), jnp.float32)],
        ),
        compiler_params=pltpu.CompilerParams(
            dimension_semantics=("arbitrary",)),
    )(x_img, kp["w1_img"], state, kp["w1_state"], kp["b1"],
      kp["w2"], kp["b2"], kp["w_heads"], kp["b_heads"])

    continuous = out[:B, :cont_dim]
    discrete = out[:B, cont_dim:cont_dim + disc_dim]
    return discrete, continuous


# ----------------------------- forward pass ---------------------------------

def qnetwork_forward(kernel_params, state, image, *, cont_dim, disc_dim,
                     block_k=2048):
    """state: (B, 9) f32, image: (B, 3, H, W) f32 -> (discrete, continuous)."""
    x_img = conv3x3_relu_nhwc(image, kernel_params["w_conv_mat"],
                              kernel_params["b_conv"])
    return fused_mlp(x_img, state, kernel_params,
                     cont_dim=cont_dim, disc_dim=disc_dim, block_k=block_k)


# ------------------------- parameter creation / packing ---------------------

def init_params(key, discrete_dim, continuous_dim, H, W):
    """PyTorch-layout parameters (same as the nn.Module, toy spatial size)."""
    def uni(k, shape, fan_in):
        bound = 1.0 / jnp.sqrt(float(fan_in))
        return jax.random.uniform(k, shape, jnp.float32, -bound, bound)

    ks = jax.random.split(key, 10)
    fc1_in = 32 * H * W + 9
    return {
        "w_conv": uni(ks[0], (32, 3, 3, 3), 3 * 9),
        "b_conv": uni(ks[1], (32,), 3 * 9),
        "w_fc1": uni(ks[2], (fc1_in, 128), fc1_in),
        "b_fc1": uni(ks[3], (128,), fc1_in),
        "w_fc2": uni(ks[4], (128, 64), 128),
        "b_fc2": uni(ks[5], (64,), 128),
        "w_cont": uni(ks[6], (64, continuous_dim), 64),
        "b_cont": uni(ks[7], (continuous_dim,), 64),
        "w_disc": uni(ks[8], (64, discrete_dim), 64),
        "b_disc": uni(ks[9], (discrete_dim,), 64),
    }


def pack_params(params, H, W, cont_dim, disc_dim, head_pad=128):
    """One-time repack of PyTorch-layout params into kernel-ready layout.

    - conv weight reshaped to a (27, 32) matmul matrix.
    - fc1 rows permuted from NCHW-flatten to NHWC-flatten order (deletes the
      post-conv transpose at runtime) and split into image / state parts
      (deletes the concat).
    - both heads packed into one zero-padded (64, 128) matrix (lane-dense
      output, single matmul).
    """
    C_out = params["w_conv"].shape[0]
    k_img = C_out * H * W

    w_fc1_img = params["w_fc1"][:k_img]          # rows in NCHW-flatten order
    w_fc1_state = params["w_fc1"][k_img:]        # (9, 128)
    hh, ww, cc = jnp.meshgrid(jnp.arange(H), jnp.arange(W), jnp.arange(C_out),
                              indexing="ij")
    nchw_idx = (cc * (H * W) + hh * W + ww).reshape(-1)   # indexed in NHWC order
    w1_img = w_fc1_img[nchw_idx]                 # (k_img, 128), NHWC row order

    n_heads = cont_dim + disc_dim
    w_heads = jnp.zeros((64, head_pad), jnp.float32)
    w_heads = w_heads.at[:, :cont_dim].set(params["w_cont"])
    w_heads = w_heads.at[:, cont_dim:n_heads].set(params["w_disc"])
    b_heads = jnp.zeros((head_pad,), jnp.float32)
    b_heads = b_heads.at[:cont_dim].set(params["b_cont"])
    b_heads = b_heads.at[cont_dim:n_heads].set(params["b_disc"])

    return {
        "w_conv_mat": params["w_conv"].reshape(C_out, -1).T,   # (27, 32)
        "b_conv": params["b_conv"],
        "w1_img": w1_img,
        "w1_state": w_fc1_state,
        "b1": params["b_fc1"].reshape(1, -1),
        "w2": params["w_fc2"],
        "b2": params["b_fc2"].reshape(1, -1),
        "w_heads": w_heads,
        "b_heads": b_heads.reshape(1, -1),
    }


# -------------------------- pure-JAX reference ------------------------------

def reference_forward(params, state, image):
    conv = jax.lax.conv_general_dilated(
        image, params["w_conv"], window_strides=(1, 1), padding="SAME",
        dimension_numbers=("NCHW", "OIHW", "NCHW"),
    ) + params["b_conv"][None, :, None, None]
    x = jnp.maximum(conv, 0.0).reshape(image.shape[0], -1)
    x = jnp.concatenate([x, state], axis=1)
    x = jnp.maximum(x @ params["w_fc1"] + params["b_fc1"], 0.0)
    x = jnp.maximum(x @ params["w_fc2"] + params["b_fc2"], 0.0)
    cont = jnp.tanh(x @ params["w_cont"] + params["b_cont"])
    disc = jax.nn.sigmoid(x @ params["w_disc"] + params["b_disc"])
    return disc, cont


# --------------------------------- main --------------------------------------

if __name__ == "__main__":
    B, H, W = 2, 16, 16
    DISCRETE_DIM, CONTINUOUS_DIM = 4, 2

    key = jax.random.PRNGKey(0)
    k_params, k_state, k_image = jax.random.split(key, 3)

    params = init_params(k_params, DISCRETE_DIM, CONTINUOUS_DIM, H, W)
    kernel_params = pack_params(params, H, W, CONTINUOUS_DIM, DISCRETE_DIM)
    state = jax.random.normal(k_state, (B, 9), jnp.float32)
    image = jax.random.normal(k_image, (B, 3, H, W), jnp.float32)

    # block_k=2048 -> 4 K-grid steps at this toy size (exercises the
    # accumulator path); at the real 256x256 size raise to ~16384 (v5e/v6e)
    # or ~8192 (v7x, 64 MiB VMEM).
    fwd = jax.jit(functools.partial(
        qnetwork_forward, cont_dim=CONTINUOUS_DIM, disc_dim=DISCRETE_DIM,
        block_k=2048))
    discrete, continuous = fwd(kernel_params, state, image)
    jax.block_until_ready((discrete, continuous))

    ref_disc, ref_cont = reference_forward(params, state, image)
    assert discrete.shape == (B, DISCRETE_DIM)
    assert continuous.shape == (B, CONTINUOUS_DIM)
    assert jnp.allclose(discrete, ref_disc, atol=1e-4, rtol=1e-4)
    assert jnp.allclose(continuous, ref_cont, atol=1e-4, rtol=1e-4)

    print("KERNEL_OK")
</pallas_src>

<mosaic_0001>
module attributes {stable_mosaic.version = 11 : i64} {
  func.func @_conv_mm_relu_kernel(%arg0: i32, %arg1: memref<128x27xf32, #tpu.memory_space<vmem>>, %arg2: memref<27x32xf32, #tpu.memory_space<vmem>>, %arg3: memref<1x32xf32, #tpu.memory_space<vmem>>, %arg4: memref<128x32xf32, #tpu.memory_space<vmem>>) attributes {dimension_semantics = [#tpu.dimension_semantics<parallel>], iteration_bounds = array<i64: 4>, scalar_prefetch = 0 : i64, scratch_operands = 0 : i64, tpu.core_type = #tpu.core_type<tc>, window_params = [{transform_indices = @transform_0, window_bounds = array<i64: 128, 27>}, {pipeline_mode = #tpu.pipeline_mode<synchronous>, transform_indices = @transform_1, window_bounds = array<i64: 27, 32>}, {pipeline_mode = #tpu.pipeline_mode<synchronous>, transform_indices = @transform_2, window_bounds = array<i64: 1, 32>}, {transform_indices = @transform_3, window_bounds = array<i64: 128, 32>}]} {
    %c0 = arith.constant 0 : index
    %c0_0 = arith.constant 0 : index
    %0 = vector.load %arg1[%c0, %c0_0] : memref<128x27xf32, #tpu.memory_space<vmem>>, vector<128x27xf32>
    %c0_1 = arith.constant 0 : index
    %c0_2 = arith.constant 0 : index
    %1 = vector.load %arg2[%c0_1, %c0_2] : memref<27x32xf32, #tpu.memory_space<vmem>>, vector<27x32xf32>
    %cst = arith.constant dense<0.000000e+00> : vector<128x32xf32>
    %2 = tpu.matmul %0, %1, %cst {dimension_numbers = #tpu.dot_dimension_numbers<[1], [0], [0], [1], [0, 0, 1, 1], [], []>} : vector<128x27xf32>, vector<27x32xf32>, vector<128x32xf32> -> vector<128x32xf32>
    %c0_3 = arith.constant 0 : index
    %c0_4 = arith.constant 0 : index
    %3 = vector.load %arg3[%c0_3, %c0_4] : memref<1x32xf32, #tpu.memory_space<vmem>>, vector<1x32xf32>
    %4 = vector.broadcast %3 : vector<1x32xf32> to vector<128x32xf32>
    %5 = arith.addf %2, %4 : vector<128x32xf32>
    %cst_5 = arith.constant 0.000000e+00 : f32
    %6 = vector.broadcast %cst_5 : f32 to vector<128x32xf32>
    %7 = arith.maximumf %5, %6 : vector<128x32xf32>
    %c0_6 = arith.constant 0 : index
    %c0_7 = arith.constant 0 : index
    %8 = vector.load %arg4[%c0_6, %c0_7] : memref<128x32xf32, #tpu.memory_space<vmem>>, vector<128x32xf32>
    tpu.vector_store %arg4[%c0_6, %c0_7], %7 {strides = array<i32>} : memref<128x32xf32, #tpu.memory_space<vmem>>, vector<128x32xf32>,
    return
  }
  func.func @transform_0(%arg0: i32) -> (i32, i32) {
    %c0_i32 = arith.constant 0 : i32
    %c0_i32_0 = arith.constant 0 : i32
    return %arg0, %c0_i32 : i32, i32
  }
  func.func @transform_1(%arg0: i32) -> (i32, i32) {
    %c0_i32 = arith.constant 0 : i32
    %c0_i32_0 = arith.constant 0 : i32
    %c0_i32_1 = arith.constant 0 : i32
    return %c0_i32, %c0_i32_0 : i32, i32
  }
  func.func @transform_2(%arg0: i32) -> (i32, i32) {
    %c0_i32 = arith.constant 0 : i32
    %c0_i32_0 = arith.constant 0 : i32
    %c0_i32_1 = arith.constant 0 : i32
    return %c0_i32, %c0_i32_0 : i32, i32
  }
  func.func @transform_3(%arg0: i32) -> (i32, i32) {
    %c0_i32 = arith.constant 0 : i32
    %c0_i32_0 = arith.constant 0 : i32
    return %arg0, %c0_i32 : i32, i32
  }
}

module attributes {stable_mosaic.version = 11 : i64} {
  func.func @_fused_mlp_kernel(%arg0: i32, %arg1: memref<8x2048xf32, #tpu.memory_space<vmem>>, %arg2: memref<2048x128xf32, #tpu.memory_space<vmem>>, %arg3: memref<8x9xf32, #tpu.memory_space<vmem>>, %arg4: memref<9x128xf32, #tpu.memory_space<vmem>>, %arg5: memref<1x128xf32, #tpu.memory_space<vmem>>, %arg6: memref<128x64xf32, #tpu.memory_space<vmem>>, %arg7: memref<1x64xf32, #tpu.memory_space<vmem>>, %arg8: memref<64x128xf32, #tpu.memory_space<vmem>>, %arg9: memref<1x128xf32, #tpu.memory_space<vmem>>, %arg10: memref<8x128xf32, #tpu.memory_space<vmem>>, %arg11: memref<8x128xf32, #tpu.memory_space<vmem>>) attributes {dimension_semantics = [#tpu.dimension_semantics<arbitrary>], iteration_bounds = array<i64: 4>, scalar_prefetch = 0 : i64, scratch_operands = 1 : i64, tpu.core_type = #tpu.core_type<tc>, window_params = [{transform_indices = @transform_0, window_bounds = array<i64: 8, 2048>}, {transform_indices = @transform_1, window_bounds = array<i64: 2048, 128>}, {pipeline_mode = #tpu.pipeline_mode<synchronous>, transform_indices = @transform_2, window_bounds = array<i64: 8, 9>}, {pipeline_mode = #tpu.pipeline_mode<synchronous>, transform_indices = @transform_3, window_bounds = array<i64: 9, 128>}, {pipeline_mode = #tpu.pipeline_mode<synchronous>, transform_indices = @transform_4, window_bounds = array<i64: 1, 128>}, {pipeline_mode = #tpu.pipeline_mode<synchronous>, transform_indices = @transform_5, window_bounds = array<i64: 128, 64>}, {pipeline_mode = #tpu.pipeline_mode<synchronous>, transform_indices = @transform_6, window_bounds = array<i64: 1, 64>}, {pipeline_mode = #tpu.pipeline_mode<synchronous>, transform_indices = @transform_7, window_bounds = array<i64: 64, 128>}, {pipeline_mode = #tpu.pipeline_mode<synchronous>, transform_indices = @transform_8, window_bounds = array<i64: 1, 128>}, {pipeline_mode = #tpu.pipeline_mode<synchronous>, transform_indices = @transform_9, window_bounds = array<i64: 8, 128>}]} {
    %c0_i32 = arith.constant 0 : i32
    %0 = arith.cmpi eq, %arg0, %c0_i32 : i32
    %1 = arith.extui %0 : i1 to i32
    %c0_i32_0 = arith.constant 0 : i32
    %2 = arith.cmpi ne, %1, %c0_i32_0 : i32
    scf.if %2 {
      %cst_9 = arith.constant 0.000000e+00 : f32
      %12 = vector.broadcast %cst_9 : f32 to vector<8x128xf32>
      %c0_10 = arith.constant 0 : index
      %c0_11 = arith.constant 0 : index
      %13 = vector.load %arg11[%c0_10, %c0_11] : memref<8x128xf32, #tpu.memory_space<vmem>>, vector<8x128xf32>
      tpu.vector_store %arg11[%c0_10, %c0_11], %12 {strides = array<i32>} : memref<8x128xf32, #tpu.memory_space<vmem>>, vector<8x128xf32>,
    } else {
    }
    %c0 = arith.constant 0 : index
    %c0_1 = arith.constant 0 : index
    %3 = vector.load %arg11[%c0, %c0_1] : memref<8x128xf32, #tpu.memory_space<vmem>>, vector<8x128xf32>
    %c0_2 = arith.constant 0 : index
    %c0_3 = arith.constant 0 : index
    %4 = vector.load %arg1[%c0_2, %c0_3] : memref<8x2048xf32, #tpu.memory_space<vmem>>, vector<8x2048xf32>
    %c0_4 = arith.constant 0 : index
    %c0_5 = arith.constant 0 : index
    %5 = vector.load %arg2[%c0_4, %c0_5] : memref<2048x128xf32, #tpu.memory_space<vmem>>, vector<2048x128xf32>
    %cst = arith.constant dense<0.000000e+00> : vector<8x128xf32>
    %6 = tpu.matmul %4, %5, %cst {dimension_numbers = #tpu.dot_dimension_numbers<[1], [0], [0], [1], [0, 0, 1, 1], [], []>} : vector<8x2048xf32>, vector<2048x128xf32>, vector<8x128xf32> -> vector<8x128xf32>
    %7 = arith.addf %3, %6 : vector<8x128xf32>
    %c0_6 = arith.constant 0 : index
    %c0_7 = arith.constant 0 : index
    %8 = vector.load %arg11[%c0_6, %c0_7] : memref<8x128xf32, #tpu.memory_space<vmem>>, vector<8x128xf32>
    tpu.vector_store %arg11[%c0_6, %c0_7], %7 {strides = array<i32>} : memref<8x128xf32, #tpu.memory_space<vmem>>, vector<8x128xf32>,
    %c3_i32 = arith.constant 3 : i32
    %9 = arith.cmpi eq, %arg0, %c3_i32 : i32
    %10 = arith.extui %9 : i1 to i32
    %c0_i32_8 = arith.constant 0 : i32
    %11 = arith.cmpi ne, %10, %c0_i32_8 : i32
    scf.if %11 {
      %c0_9 = arith.constant 0 : index
      %c0_10 = arith.constant 0 : index
      %12 = vector.load %arg11[%c0_9, %c0_10] : memref<8x128xf32, #tpu.memory_space<vmem>>, vector<8x128xf32>
      %c0_11 = arith.constant 0 : index
      %c0_12 = arith.constant 0 : index
      %13 = vector.load %arg3[%c0_11, %c0_12] : memref<8x9xf32, #tpu.memory_space<vmem>>, vector<8x9xf32>
      %c0_13 = arith.constant 0 : index
      %c0_14 = arith.constant 0 : index
      %14 = vector.load %arg4[%c0_13, %c0_14] : memref<9x128xf32, #tpu.memory_space<vmem>>, vector<9x128xf32>
      %cst_15 = arith.constant dense<0.000000e+00> : vector<8x128xf32>
      %15 = tpu.matmul %13, %14, %cst_15 {dimension_numbers = #tpu.dot_dimension_numbers<[1], [0], [0], [1], [0, 0, 1, 1], [], []>} : vector<8x9xf32>, vector<9x128xf32>, vector<8x128xf32> -> vector<8x128xf32>
      %16 = arith.addf %12, %15 : vector<8x128xf32>
      %c0_16 = arith.constant 0 : index
      %c0_17 = arith.constant 0 : index
      %17 = vector.load %arg5[%c0_16, %c0_17] : memref<1x128xf32, #tpu.memory_space<vmem>>, vector<1x128xf32>
      %18 = vector.broadcast %17 : vector<1x128xf32> to vector<8x128xf32>
      %19 = arith.addf %16, %18 : vector<8x128xf32>
      %cst_18 = arith.constant 0.000000e+00 : f32
      %20 = vector.broadcast %cst_18 : f32 to vector<8x128xf32>
      %21 = arith.maximumf %19, %20 : vector<8x128xf32>
      %c0_19 = arith.constant 0 : index
      %c0_20 = arith.constant 0 : index
      %22 = vector.load %arg6[%c0_19, %c0_20] : memref<128x64xf32, #tpu.memory_space<vmem>>, vector<128x64xf32>
      %cst_21 = arith.constant dense<0.000000e+00> : vector<8x64xf32>
      %23 = tpu.matmul %21, %22, %cst_21 {dimension_numbers = #tpu.dot_dimension_numbers<[1], [0], [0], [1], [0, 0, 1, 1], [], []>} : vector<8x128xf32>, vector<128x64xf32>, vector<8x64xf32> -> vector<8x64xf32>
      %c0_22 = arith.constant 0 : index
      %c0_23 = arith.constant 0 : index
      %24 = vector.load %arg7[%c0_22, %c0_23] : memref<1x64xf32, #tpu.memory_space<vmem>>, vector<1x64xf32>
      %25 = vector.broadcast %24 : vector<1x64xf32> to vector<8x64xf32>
      %26 = arith.addf %23, %25 : vector<8x64xf32>
      %cst_24 = arith.constant 0.000000e+00 : f32
      %27 = vector.broadcast %cst_24 : f32 to vector<8x64xf32>
      %28 = arith.maximumf %26, %27 : vector<8x64xf32>
      %c0_25 = arith.constant 0 : index
      %c0_26 = arith.constant 0 : index
      %29 = vector.load %arg8[%c0_25, %c0_26] : memref<64x128xf32, #tpu.memory_space<vmem>>, vector<64x128xf32>
      %cst_27 = arith.constant dense<0.000000e+00> : vector<8x128xf32>
      %30 = tpu.matmul %28, %29, %cst_27 {dimension_numbers = #tpu.dot_dimension_numbers<[1], [0], [0], [1], [0, 0, 1, 1], [], []>} : vector<8x64xf32>, vector<64x128xf32>, vector<8x128xf32> -> vector<8x128xf32>
      %c0_28 = arith.constant 0 : index
      %c0_29 = arith.constant 0 : index
      %31 = vector.load %arg9[%c0_28, %c0_29] : memref<1x128xf32, #tpu.memory_space<vmem>>, vector<1x128xf32>
      %32 = vector.broadcast %31 : vector<1x128xf32> to vector<8x128xf32>
      %33 = arith.addf %30, %32 : vector<8x128xf32>
      %34 = tpu.iota {dimensions = array<i32: 1>} : vector<8x128xi32>
      %c2_i32 = arith.constant 2 : i32
      %35 = vector.broadcast %c2_i32 : i32 to vector<8x128xi32>
      %36 = arith.cmpi slt, %34, %35 : vector<8x128xi32>
      %37 = math.tanh %33 : vector<8x128xf32>
      %38 = arith.negf %33 : vector<8x128xf32>
      %39 = math.exp %38 : vector<8x128xf32>
      %cst_30 = arith.constant 1.000000e+00 : f32
      %40 = vector.broadcast %cst_30 : f32 to vector<8x128xf32>
      %41 = arith.addf %40, %39 : vector<8x128xf32>
      %42 = arith.divf %40, %41 : vector<8x128xf32>
      %43 = arith.select %36, %37, %42 : vector<8x128xi1>, vector<8x128xf32>
      %c0_31 = arith.constant 0 : index
      %c0_32 = arith.constant 0 : index
      %44 = vector.load %arg10[%c0_31, %c0_32] : memref<8x128xf32, #tpu.memory_space<vmem>>, vector<8x128xf32>
      tpu.vector_store %arg10[%c0_31, %c0_32], %43 {strides = array<i32>} : memref<8x128xf32, #tpu.memory_space<vmem>>, vector<8x128xf32>,
    } else {
    }
    return
  }
  func.func @transform_0(%arg0: i32) -> (i32, i32) {
    %c0_i32 = arith.constant 0 : i32
    %c0_i32_0 = arith.constant 0 : i32
    return %c0_i32, %arg0 : i32, i32
  }
  func.func @transform_1(%arg0: i32) -> (i32, i32) {
    %c0_i32 = arith.constant 0 : i32
    %c0_i32_0 = arith.constant 0 : i32
    return %arg0, %c0_i32 : i32, i32
  }
  func.func @transform_2(%arg0: i32) -> (i32, i32) {
    %c0_i32 = arith.constant 0 : i32
    %c0_i32_0 = arith.constant 0 : i32
    %c0_i32_1 = arith.constant 0 : i32
    return %c0_i32, %c0_i32_0 : i32, i32
  }
  func.func @transform_3(%arg0: i32) -> (i32, i32) {
    %c0_i32 = arith.constant 0 : i32
    %c0_i32_0 = arith.constant 0 : i32
    %c0_i32_1 = arith.constant 0 : i32
    return %c0_i32, %c0_i32_0 : i32, i32
  }
  func.func @transform_4(%arg0: i32) -> (i32, i32) {
    %c0_i32 = arith.constant 0 : i32
    %c0_i32_0 = arith.constant 0 : i32
    %c0_i32_1 = arith.constant 0 : i32
    return %c0_i32, %c0_i32_0 : i32, i32
  }
  func.func @transform_5(%arg0: i32) -> (i32, i32) {
    %c0_i32 = arith.constant 0 : i32
    %c0_i32_0 = arith.constant 0 : i32
    %c0_i32_1 = arith.constant 0 : i32
    return %c0_i32, %c0_i32_0 : i32, i32
  }
  func.func @transform_6(%arg0: i32) -> (i32, i32) {
    %c0_i32 = arith.constant 0 : i32
    %c0_i32_0 = arith.constant 0 : i32
    %c0_i32_1 = arith.constant 0 : i32
    return %c0_i32, %c0_i32_0 : i32, i32
  }
  func.func @transform_7(%arg0: i32) -> (i32, i32) {
    %c0_i32 = arith.constant 0 : i32
    %c0_i32_0 = arith.constant 0 : i32
    %c0_i32_1 = arith.constant 0 : i32
    return %c0_i32, %c0_i32_0 : i32, i32
  }
  func.func @transform_8(%arg0: i32) -> (i32, i32) {
    %c0_i32 = arith.constant 0 : i32
    %c0_i32_0 = arith.constant 0 : i32
    %c0_i32_1 = arith.constant 0 : i32
    return %c0_i32, %c0_i32_0 : i32, i32
  }
  func.func @transform_9(%arg0: i32) -> (i32, i32) {
    %c0_i32 = arith.constant 0 : i32
    %c0_i32_0 = arith.constant 0 : i32
    %c0_i32_1 = arith.constant 0 : i32
    return %c0_i32, %c0_i32_0 : i32, i32
  }
}

</mosaic_0001>

<bundles_post_ra>
// kernel: qnetwork_forward.2
= control target key start
LH: loop header
LB: loop body
LE: loop exit
PB: predicated region body
PF: predicated region fallthrough
CT: control target
= control target key end

     0   :  { %8 = vsyncpa [#allocation3], 0  ;;  %s938_s0 = inlined_call_operand.vmem [shape: f32[512,27], index: 0, kind: input, shape index: {}]   ;;  %s939_s1 = inlined_call_operand.hbm [shape: f32[27,32], index: 1, kind: input, shape index: {}]   ;;  %s940_s2 = inlined_call_operand.hbm [shape: f32[1,32], index: 2, kind: input, shape index: {}]   ;;  %s941_s3 = inlined_call_operand.vmem [shape: f32[512,32], index: 3, kind: output, shape index: {}]  }
   0x1   :  { %9 = vsyncpa [#allocation5], 0  ;;  %s766_s12 = smov 0  }
   0x2 LB: > { %s538_s13 = sadd.s32 4294967295, %s739_s12   ;;  %p540_p0 = scmp.ge.s32.totalorder %s739_s12, 1  ;;  %s739_s12 = sphi %s766_s12, %s15_s12  }
   0x3   : > { %p114_p1 = scmp.lt.s32.totalorder %s739_s12, 5  ;;  %s741_s14 = smov [#allocation2]  }
   0x4   : > { %s126_s15 = sshll.u32 %s741_s14, 4  ;;  %p780_p3 = scmp.eq.s32.totalorder %s538_s13, 0  ;;  %s127_s15 = int_to_ptr.vmem [resolvable:$true] %s126_s15 }
   0x5   : > { %p774_p2 = pnand %p540_p0, %p114_p1  ;;  %s742_s18 = smov [#allocation4]  }
   0x6   : > { %s946_s17 = scalar_select %p780_p3, 1, 0 }
   0x7   : > { %s945_s16 = scalar_select %p774_p2, 1, 0 }
   0x8   : > { %p645_p4 = pneg %p774_p2  ;;  %s140_s19 = sshll.u32 %s742_s18, 4  ;;  %s792_s19 = int_to_ptr.vmem [resolvable:$true] %s140_s19 }
   0x9   : > { %s669_s23 = scalar_lea.hbm %s939_s1, 512 }
   0xa   : > { %p788_p5 = pnand %p780_p3, %p645_p4  ;;  %p670_p6 = scmp.ne.s32.totalorder %s939_s1, %s669_s23 }
   0xb   : > { %p676_p10 = scmp.lt.u32.totalorder %s669_s23, %s939_s1 }
   0xc   : > { %p671_p7 = pneg %p788_p5 }
   0xe   : > { %p672_p8 = pnand %p671_p7, %p670_p6 }
  0x10   : > { %p673_p9 = pneg %p672_p8 }
  0x12   : > { %p678_p11 = pnand %p676_p10, %p673_p9 }
  0x14   : > { %681 = shalt.err (!%p678_p11)
}
  0x15   : > { %s682_s28 = scalar_lea.vmem %s127_s15, 512  ;;  %p690_p1 = scmp.lt.s32.totalorder %s127_s15, %s127_s15 }
  0x16   : > { %p683_p12 = scmp.ne.s32.totalorder %s127_s15, %s682_s28  ;;  %p691_p4 = scmp.lt.s32.totalorder %s682_s28, %s682_s28 }
  0x18   : > { %p685_p13 = pnand %p683_p12, %p671_p7  ;;  %p692_p3 = por %p691_p4, %p690_p1 }
  0x1a   : > { %p686_p0 = pneg %p685_p13 }
  0x1c   : > { %p693_p2 = pnand %p692_p3, %p686_p0 }
  0x1e   : > { %696 = shalt.err (!%p693_p2)
}
  0x1f   : > { %s743_s29 = smov 128   ;;  %s744_s30 = smov 8  }
  0x20   : > { %648 = dma.hbm_to_vmem [thread:$0]  (!%p788_p5), %s939_s1, 512, %s127_s15, [#allocation3], %s743_s29, %s743_s29, %s744_s30  }
  0x21   : > { %s697_s8 = scalar_lea.hbm %s940_s2, 16 }
  0x22   : > { %p698_p6 = scmp.ne.s32.totalorder %s940_s2, %s697_s8  ;;  %p704_p8 = scmp.lt.u32.totalorder %s697_s8, %s940_s2 }
  0x24   : > { %p700_p2 = pnand %p698_p6, %p671_p7 }
  0x26   : > { %p701_p3 = pneg %p700_p2 }
  0x28   : > { %p706_p9 = pnand %p704_p8, %p701_p3 }
  0x2a   : > { %709 = shalt.err (!%p706_p9)
}
  0x2b   : > { %s710_s15 = scalar_lea.vmem %s792_s19, 16  ;;  %s717_s18 = scalar_lea.vmem %s792_s19, 32 }
  0x2c   : > { %p711_p10 = scmp.ne.s32.totalorder %s792_s19, %s710_s15  ;;  %p718_p13 = scmp.lt.s32.totalorder %s792_s19, %s792_s19 }
  0x2d   : > { %p719_p0 = scmp.lt.s32.totalorder %s717_s18, %s710_s15 }
  0x2e   : > { %p713_p11 = pnand %p711_p10, %p671_p7 }
  0x2f   : > { %p720_p1 = por %p719_p0, %p718_p13 }
  0x30   : > { %p714_p12 = pneg %p713_p11 }
  0x32   : > { %p721_p4 = pnand %p720_p1, %p714_p12 }
  0x34   : > { %724 = shalt.err (!%p721_p4)
}
  0x35   : > { %651 = dma.hbm_to_vmem [thread:$0]  (!%p788_p5), %s940_s2, 16, %s792_s19, [#allocation5]  }
  0x36   : > { %p948_p6 = scmp.ne.s32.totalorder %s945_s16, 0 }
  0x37   : > { %p949_p7 = scmp.ne.s32.totalorder (!%p948_p6), %s946_s17, 0 }
  0x38   : > { %162 = sbr.rel (%p948_p6) target bundleno = 308 (0x134), region = 32 }
  0x3f   : > { %730 = dma.done.wait (%p949_p7), [#allocation3], 512  }
  0x40   : > { %732 = vsyncadd (%p949_p7), [#allocation3], 4294966784 }
  0x41   : > { %734 = dma.done.wait (%p949_p7), [#allocation5], 16  }
  0x42   : > { %736 = vsyncadd (%p949_p7), [#allocation5], 4294967280  ;;  %s547_s20 = sshll.u32 %s538_s13, 4  ;;  %vm278_vm0 = vcmask 1042432   ;;  %vm229_vm1 = vcmask 220160   ;;  %v218_v0 = vld [vmem:[#allocation2] sm:$0xff] }
  0x43   : > { %p191_p2 = scmp.lt.s32.totalorder %s547_s20, 63  ;;  %v219_v1 = vld [vmem:[#allocation2 + $0x8] sm:$0xff]  ;;  %v220_v2 = vld [vmem:[#allocation2 + $0x10] sm:$0xff]  ;;  %v221_v4 = vld [vmem:[#allocation2 + $0x18] sm:$0x7]  ;;  %vm745_vm2 = vmmov 1  }
  0x44   : > { %v623_v3 = vpack.c.bf16 %v219_v1, %v218_v0  ;;  %v627_v7 = vpack.c.bf16 %v221_v4, %v220_v2  ;;  %vm628_vm3 = vmpackc.low %vm278_vm0, %vm745_vm2  ;;  %v551_v22 = vld [vmem:[#allocation4] ss:$0 sm:$0xff]  ;;  %vm443_vm4 = vcmask 261120  }
  0x45   : > { %s951_s20 = smov (!%p191_p2, %s547_s20), 63 }
  0x46   : > { %s548_s16 = sshll.u32 %s951_s20, 3  ;;  %624 = vmatprep.subr.bf16.mxu0 %v623_v3  ;;  %633 = vmatprep.subr.bf16.mxu1 %v623_v3 }
  0x47   : > { %s862_s24 = scalar_lea.vmem %s938_s0, %s548_s16  ;;  %626 = vmatpush3.bf16.msra.mxu0 %v623_v3  ;;  %635 = vmatpush3.bf16.msra.mxu1 %v623_v3  ;;  %s901_s25 = scalar_lea.vmem %s941_s3, %s548_s16 }
  0x48   : > { %v202_v5 = vld [vmem:[%s862_s24] sm:$0xff]  ;;  %629 = vmatprep.subr.msk.bf16.mxu0 %vm628_vm3, %v627_v7  ;;  %634 = vmatprep.subr.msk.bf16.mxu1 %vm628_vm3, %v627_v7  ;;  %v203_v8 = vld [vmem:[%s862_s24 + $0x8] sm:$0xff]  ;;  %v204_v10 = vld [vmem:[%s862_s24 + $0x10] sm:$0xff] }
  0x49   : > { %v210_v6 = vld [vmem:[%s862_s24 + $0x40] sm:$0xff]  ;;  %599 = vmatprep.mubr.msk.f32.mxu0 %vm229_vm1, %v202_v5  ;;  %v211_v9 = vld [vmem:[%s862_s24 + $0x48] sm:$0xff]  ;;  %v212_v11 = vld [vmem:[%s862_s24 + $0x50] sm:$0xff] }
  0x4a   : > { %611 = vmatprep.mubr.msk.f32.mxu1 %vm229_vm1, %v210_v6  ;;  %v205_v12 = vld [vmem:[%s862_s24 + $0x18] sm:$0xff]  ;;  %v206_v14 = vld [vmem:[%s862_s24 + $0x20] sm:$0xff]  ;;  %v207_v16 = vld [vmem:[%s862_s24 + $0x28] sm:$0xff] }
  0x4b   : > { %632 = vmatpush3.bf16.msk.msra.mxu0 %vm628_vm3, %v627_v7  ;;  %636 = vmatpush3.bf16.msk.msra.mxu1 %vm628_vm3, %v627_v7  ;;  %v213_v13 = vld [vmem:[%s862_s24 + $0x58] sm:$0xff]  ;;  %v214_v15 = vld [vmem:[%s862_s24 + $0x60] sm:$0xff]  ;;  %v215_v17 = vld [vmem:[%s862_s24 + $0x68] sm:$0xff] }
  0x4c   : > { %v208_v18 = vld [vmem:[%s862_s24 + $0x30] sm:$0xff]  ;;  %v209_v20 = vld [vmem:[%s862_s24 + $0x38] sm:$0xff] }
  0x4d   : > { %v216_v19 = vld [vmem:[%s862_s24 + $0x70] sm:$0xff]  ;;  %v217_v21 = vld [vmem:[%s862_s24 + $0x78] sm:$0xff] }
  0x4e   : > { %600 = vmatmul.mubr.msk.f32.vlgmr.msra.gmra.mrb[0].mxu0 %vm229_vm1, %v203_v8  ;;  %612 = vmatmul.mubr.msk.f32.vlgmr.msra.gmra.mrb[0].mxu1 %vm229_vm1, %v211_v9 }
  0x4f   : > { %602 = vmatprep.mubr.msk.f32.mxu0 %vm229_vm1, %v204_v10  ;;  %614 = vmatprep.mubr.msk.f32.mxu1 %vm229_vm1, %v212_v11 }
  0x52   : > { %603 = vmatmul.mubr.msk.f32.gmra.mrb[2].mxu0 %vm229_vm1, %v205_v12  ;;  %615 = vmatmul.mubr.msk.f32.gmra.mrb[2].mxu1 %vm229_vm1, %v213_v13 }
  0x53   : > { %605 = vmatprep.mubr.msk.f32.mxu0 %vm229_vm1, %v206_v14  ;;  %617 = vmatprep.mubr.msk.f32.mxu1 %vm229_vm1, %v214_v15 }
  0x56   : > { %606 = vmatmul.mubr.msk.f32.gmra.mrb[4].mxu0 %vm229_vm1, %v207_v16  ;;  %618 = vmatmul.mubr.msk.f32.gmra.mrb[4].mxu1 %vm229_vm1, %v215_v17 }
  0x57   : > { %608 = vmatprep.mubr.msk.f32.mxu0 %vm229_vm1, %v208_v18  ;;  %620 = vmatprep.mubr.msk.f32.mxu1 %vm229_vm1, %v216_v19 }
  0x5a   : > { %609 = vmatmul.mubr.msk.f32.gmra.mrb[6].mxu0 %vm229_vm1, %v209_v20  ;;  %621 = vmatmul.mubr.msk.f32.gmra.mrb[6].mxu1 %vm229_vm1, %v217_v21 }
 0x121   : > { %v601_v23 = vpop.f32.mrb[0].mxu0  ;;  %v613_v24 = vpop.f32.mrb[0].mxu1 }
 0x122   : > { %v354_v25 = vadd.f32 %v601_v23, %v551_v22  ;;  %v394_v26 = vadd.f32 %v613_v24, %v551_v22  ;;  %v348_v27 = vpop.f32.mrb[1].mxu0  ;;  %v388_v28 = vpop.f32.mrb[1].mxu1 }
 0x123   : > { %v349_v29 = vadd.f32 %v551_v22, %v348_v27  ;;  %v389_v30 = vadd.f32 %v551_v22, %v388_v28 }
 0x124   : > { %v428_v31 = vmax.f32 %v354_v25, 0.0  ;;  %v436_v32 = vmax.f32 %v394_v26, 0.0 }
 0x125   : > { %v427_v33 = vmax.f32 %v349_v29, 0.0  ;;  %v435_v34 = vmax.f32 %v389_v30, 0.0  ;;  %v604_v35 = vpop.f32.mrb[2].mxu0  ;;  %v616_v36 = vpop.f32.mrb[2].mxu1 }
 0x126   : > { %445 = vst.msk [vmem:[%s901_s25 + $0x8] sm:$0xff] %vm443_vm4, %v428_v31  ;;  %453 = vst.msk [vmem:[%s901_s25 + $0x48] sm:$0xff] %vm443_vm4, %v436_v32  ;;  %v364_v37 = vadd.f32 %v604_v35, %v551_v22  ;;  %v404_v38 = vadd.f32 %v616_v36, %v551_v22  ;;  %v358_v39 = vpop.f32.mrb[3].mxu0  ;;  %v398_v40 = vpop.f32.mrb[3].mxu1 }
 0x127   : > { %444 = vst.msk [vmem:[%s901_s25] sm:$0xff] %vm443_vm4, %v427_v33  ;;  %452 = vst.msk [vmem:[%s901_s25 + $0x40] sm:$0xff] %vm443_vm4, %v435_v34  ;;  %v359_v41 = vadd.f32 %v551_v22, %v358_v39  ;;  %v399_v42 = vadd.f32 %v551_v22, %v398_v40 }
 0x128   : > { %v430_v43 = vmax.f32 %v364_v37, 0.0  ;;  %v438_v44 = vmax.f32 %v404_v38, 0.0 }
 0x129   : > { %v429_v45 = vmax.f32 %v359_v41, 0.0  ;;  %v437_v46 = vmax.f32 %v399_v42, 0.0  ;;  %v607_v47 = vpop.f32.mrb[4].mxu0  ;;  %v619_v48 = vpop.f32.mrb[4].mxu1 }
 0x12a   : > { %447 = vst.msk [vmem:[%s901_s25 + $0x18] sm:$0xff] %vm443_vm4, %v430_v43  ;;  %455 = vst.msk [vmem:[%s901_s25 + $0x58] sm:$0xff] %vm443_vm4, %v438_v44  ;;  %v374_v49 = vadd.f32 %v607_v47, %v551_v22  ;;  %v414_v50 = vadd.f32 %v619_v48, %v551_v22  ;;  %v368_v51 = vpop.f32.mrb[5].mxu0  ;;  %v408_v52 = vpop.f32.mrb[5].mxu1 }
 0x12b   : > { %446 = vst.msk [vmem:[%s901_s25 + $0x10] sm:$0xff] %vm443_vm4, %v429_v45  ;;  %454 = vst.msk [vmem:[%s901_s25 + $0x50] sm:$0xff] %vm443_vm4, %v437_v46  ;;  %v369_v53 = vadd.f32 %v551_v22, %v368_v51  ;;  %v409_v54 = vadd.f32 %v551_v22, %v408_v52 }
 0x12c   : > { %v432_v55 = vmax.f32 %v374_v49, 0.0  ;;  %v440_v56 = vmax.f32 %v414_v50, 0.0 }
 0x12d   : > { %v431_v57 = vmax.f32 %v369_v53, 0.0  ;;  %v439_v58 = vmax.f32 %v409_v54, 0.0  ;;  %v610_v59 = vpop.f32.mrb[6].mxu0  ;;  %v622_v60 = vpop.f32.mrb[6].mxu1 }
 0x12e   : > { %449 = vst.msk [vmem:[%s901_s25 + $0x28] sm:$0xff] %vm443_vm4, %v432_v55  ;;  %457 = vst.msk [vmem:[%s901_s25 + $0x68] sm:$0xff] %vm443_vm4, %v440_v56  ;;  %v384_v61 = vadd.f32 %v610_v59, %v551_v22  ;;  %v424_v62 = vadd.f32 %v622_v60, %v551_v22  ;;  %v378_v63 = vpop.f32.mrb[7].mxu0  ;;  %v418_v0 = vpop.f32.mrb[7].mxu1 }
 0x12f   : > { %448 = vst.msk [vmem:[%s901_s25 + $0x20] sm:$0xff] %vm443_vm4, %v431_v57  ;;  %456 = vst.msk [vmem:[%s901_s25 + $0x60] sm:$0xff] %vm443_vm4, %v439_v58  ;;  %v379_v1 = vadd.f32 %v551_v22, %v378_v63  ;;  %v419_v2 = vadd.f32 %v551_v22, %v418_v0 }
 0x130   : > { %v434_v3 = vmax.f32 %v384_v61, 0.0  ;;  %v442_v4 = vmax.f32 %v424_v62, 0.0 }
 0x131   : > { %v433_v5 = vmax.f32 %v379_v1, 0.0  ;;  %v441_v6 = vmax.f32 %v419_v2, 0.0 }
 0x132   : > { %451 = vst.msk [vmem:[%s901_s25 + $0x38] sm:$0xff] %vm443_vm4, %v434_v3  ;;  %459 = vst.msk [vmem:[%s901_s25 + $0x78] sm:$0xff] %vm443_vm4, %v442_v4 }
 0x133   : > { %450 = vst.msk [vmem:[%s901_s25 + $0x30] sm:$0xff] %vm443_vm4, %v433_v5  ;;  %458 = vst.msk [vmem:[%s901_s25 + $0x70] sm:$0xff] %vm443_vm4, %v441_v6 }
 0x134 PF: > { %s15_s12 = sadd.s32 1, %s739_s12  }
 0x135   : > { %p12_p5 = scmp.ge.s32.totalorder %s15_s12, 6  }
 0x137   :  { %14 = sbr.rel (!%p12_p5) target bundleno = 2 (0x2), region = 71 }
 0x13e   :  { %482 = vsyncpa [#allocation3], 1 }
 0x13f   :  { %484 = vsyncpa [#allocation3 + $0x1], 1 }
 0x140   :  { %485 = vsyncpa [#allocation5], 1 }

// kernel: qnetwork_forward.3
= control target key start
LH: loop header
LB: loop body
LE: loop exit
PB: predicated region body
PF: predicated region fallthrough
CT: control target
= control target key end

     0   :  { %s3354_s0 = inlined_call_operand.vmem [shape: f32[8,8192], index: 0, kind: input, shape index: {}]   ;;  %s3355_s1 = inlined_call_operand.hbm [shape: f32[8192,128], index: 1, kind: input, shape index: {}]   ;;  %s3356_s2 = inlined_call_operand.vmem [shape: f32[8,9], index: 2, kind: input, shape index: {}]   ;;  %s3357_s3 = inlined_call_operand.hbm [shape: f32[9,128], index: 3, kind: input, shape index: {}]   ;;  %s3358_s4 = inlined_call_operand.hbm [shape: f32[1,128], index: 4, kind: input, shape index: {}]   ;;  %s3359_s5 = inlined_call_operand.vmem [shape: f32[128,64], index: 5, kind: input, shape index: {}]   ;;  %s3360_s6 = inlined_call_operand.hbm [shape: f32[1,64], index: 6, kind: input, shape index: {}]   ;;  %s3361_s7 = inlined_call_operand.hbm [shape: f32[64,128], index: 7, kind: input, shape index: {}]   ;;  %s3362_s8 = inlined_call_operand.hbm [shape: f32[1,128], index: 8, kind: input, shape index: {}]   ;;  %s3363_s9 = inlined_call_operand.vmem [shape: f32[8,128], index: 9, kind: output, shape index: {}]  }
   0x1   :  { %3368 = sst [smem:[#allocation17_spill]] %s3363_s9 }
   0x2   :  { %14 = vsyncpa [#allocation4], 0 }
   0x3   :  { %16 = vsyncpa [#allocation4 + $0x1], 0 }
   0x4   :  { %17 = vsyncpa [#allocation6], 0 }
   0x5   :  { %18 = vsyncpa [#allocation9], 0 }
   0x6   :  { %19 = vsyncpa [#allocation12], 0  ;;  %s2740_s30 = smov 0   ;;  %s2742_s10 = smov 0  }
   0x7   :  { %s2744_s11 = smov 0   ;;  %s2746_s12 = smov 0  }
   0x8 LB: > { %s2677_s13 = smov [#allocation5]   ;;  %s2761_s15 = sadd.s32 4294967295, %s2675_s12   ;;  %s2675_s12 = sphi %s2746_s12, %s3388_s12   ;;  %s2671_s11 = sphi %s2744_s11, %s3387_s11   ;;  %s2667_s10 = sphi %s2742_s10, %s3386_s10   ;;  %s2663_s30 = sphi %s2740_s30, %s3385_s30  }
   0x9   : > { %s265_s14 = sshll.u32 %s2677_s13, 4  ;;  %p1659_p0 = scmp.ge.s32.totalorder %s2675_s12, 1  ;;  %s2767_s14 = int_to_ptr.vmem [resolvable:$true] %s265_s14 }
   0xa   : > { %p3366_p1 = scmp.eq.s32.totalorder %s2761_s15, 0  ;;  %p250_p2 = scmp.lt.s32.totalorder %s2675_s12, 5 }
   0xb   : > { %s2678_s17 = smov [#allocation8]   ;;  %s2679_s20 = smov [#allocation7]  }
   0xc   : > { %p2769_p4 = pnand %p1659_p0, %p250_p2  ;;  %s293_s18 = sshll.u32 %s2678_s17, 4  ;;  %s2781_s18 = int_to_ptr.vmem [resolvable:$true] %s293_s18 }
   0xd   : > { %s279_s21 = sshll.u32 %s2679_s20, 4  ;;  %s2459_s24 = scalar_lea.hbm %s3357_s3, 256  ;;  %s2783_s21 = int_to_ptr.vmem [resolvable:$true] %s279_s21 }
   0xe   : > { %s3369_s16 = scalar_select %p2769_p4, 1, 0 }
   0xf   : > { %p2378_p5 = pneg %p2769_p4  ;;  %p2460_p7 = scmp.ne.s32.totalorder %s3357_s3, %s2459_s24 }
  0x10   : > { %p2466_p11 = scmp.lt.u32.totalorder %s2459_s24, %s3357_s3 }
  0x11   : > { %p2777_p6 = pnand %p2378_p5, %p3366_p1 }
  0x13   : > { %p2793_p8 = pneg %p2777_p6 }
  0x15   : > { %p2462_p9 = pnand %p2793_p8, %p2460_p7 }
  0x17   : > { %p2463_p10 = pneg %p2462_p9 }
  0x19   : > { %p2468_p12 = pnand %p2466_p11, %p2463_p10 }
  0x1b   : > { %2471 = shalt.err (!%p2468_p12)
}
  0x1c   : > { %s2472_s13 = scalar_lea.vmem %s2767_s14, 256  ;;  %p2480_p5 = scmp.lt.s32.totalorder %s2767_s14, %s2767_s14 }
  0x1d   : > { %p2473_p13 = scmp.ne.s32.totalorder %s2767_s14, %s2472_s13  ;;  %p2481_p3 = scmp.lt.s32.totalorder %s2472_s13, %s2472_s13 }
  0x1f   : > { %p2475_p0 = pnand %p2473_p13, %p2793_p8  ;;  %p2482_p7 = por %p2481_p3, %p2480_p5 }
  0x21   : > { %p2476_p2 = pneg %p2475_p0 }
  0x23   : > { %p2483_p9 = pnand %p2482_p7, %p2476_p2 }
  0x25   : > { %2486 = shalt.err (!%p2483_p9)
}
  0x26   : > { %s3364_s17 = smov 128   ;;  %s2681_s20 = smov 8  }
  0x27   : > { %2381 = dma.hbm_to_vmem [thread:$0]  (!%p2777_p6), %s3357_s3, 256, %s2767_s14, [#allocation6], %s3364_s17, %s3364_s17, %s2681_s20  }
  0x28   : > { %s2487_s26 = scalar_lea.hbm %s3360_s6, 16 }
  0x29   : > { %p2488_p3 = scmp.ne.s32.totalorder %s3360_s6, %s2487_s26  ;;  %p2494_p12 = scmp.lt.u32.totalorder %s2487_s26, %s3360_s6 }
  0x2b   : > { %p2490_p10 = pnand %p2488_p3, %p2793_p8 }
  0x2d   : > { %p2491_p11 = pneg %p2490_p10 }
  0x2f   : > { %p2496_p13 = pnand %p2494_p12, %p2491_p11 }
  0x31   : > { %2499 = shalt.err (!%p2496_p13)
}
  0x32   : > { %s2500_s14 = scalar_lea.vmem %s2781_s18, 16  ;;  %s2507_s22 = scalar_lea.vmem %s2781_s18, 32 }
  0x33   : > { %p2501_p0 = scmp.ne.s32.totalorder %s2781_s18, %s2500_s14  ;;  %p2508_p7 = scmp.lt.s32.totalorder %s2781_s18, %s2781_s18 }
  0x34   : > { %p2509_p9 = scmp.lt.s32.totalorder %s2507_s22, %s2500_s14 }
  0x35   : > { %p2503_p2 = pnand %p2501_p0, %p2793_p8 }
  0x36   : > { %p2510_p3 = por %p2509_p9, %p2508_p7 }
  0x37   : > { %p2504_p5 = pneg %p2503_p2 }
  0x39   : > { %p2511_p10 = pnand %p2510_p3, %p2504_p5 }
  0x3b   : > { %2514 = shalt.err (!%p2511_p10)
}
  0x3c   : > { %2387 = dma.hbm_to_vmem [thread:$0]  (!%p2777_p6), %s3360_s6, 16, %s2781_s18, [#allocation9]  }
  0x3d   : > { %s2515_s26 = scalar_lea.hbm %s3358_s4, 16 }
  0x3e   : > { %p2516_p11 = scmp.ne.s32.totalorder %s3358_s4, %s2515_s26  ;;  %p2522_p0 = scmp.lt.u32.totalorder %s2515_s26, %s3358_s4 }
  0x40   : > { %p2518_p12 = pnand %p2516_p11, %p2793_p8 }
  0x42   : > { %p2519_p13 = pneg %p2518_p12 }
  0x44   : > { %p2524_p2 = pnand %p2522_p0, %p2519_p13 }
  0x46   : > { %2527 = shalt.err (!%p2524_p2)
}
  0x47   : > { %s2528_s18 = scalar_lea.vmem %s2783_s21, 16  ;;  %s2535_s22 = scalar_lea.vmem %s2783_s21, 32 }
  0x48   : > { %p2529_p5 = scmp.ne.s32.totalorder %s2783_s21, %s2528_s18  ;;  %p2536_p3 = scmp.lt.s32.totalorder %s2783_s21, %s2783_s21 }
  0x49   : > { %p2537_p10 = scmp.lt.s32.totalorder %s2535_s22, %s2528_s18 }
  0x4a   : > { %p2531_p7 = pnand %p2529_p5, %p2793_p8 }
  0x4b   : > { %p2538_p11 = por %p2537_p10, %p2536_p3 }
  0x4c   : > { %p2532_p9 = pneg %p2531_p7 }
  0x4e   : > { %p2539_p12 = pnand %p2538_p11, %p2532_p9 }
  0x50   : > { %2542 = shalt.err (!%p2539_p12)
}
  0x51   : > { %2384 = dma.hbm_to_vmem [thread:$0]  (!%p2777_p6), %s3358_s4, 16, %s2783_s21, [#allocation6]  }
  0x52   : > { %s2682_s24 = smov [#allocation10]   ;;  %s2683_s26 = smov [#allocation11]  }
  0x53   : > { %s303_s25 = sshll.u32 %s2682_s24, 4  ;;  %s317_s28 = sshll.u32 %s2683_s26, 4  ;;  %s304_s25 = int_to_ptr.vmem [resolvable:$true] %s303_s25  ;;  %s318_s28 = int_to_ptr.vmem [resolvable:$true] %s317_s28 }
  0x54   : > { %s2543_s14 = scalar_lea.hbm %s3361_s7, 1024 }
  0x55   : > { %p2544_p13 = scmp.ne.s32.totalorder %s3361_s7, %s2543_s14  ;;  %p2550_p5 = scmp.lt.u32.totalorder %s2543_s14, %s3361_s7 }
  0x57   : > { %p2546_p0 = pnand %p2544_p13, %p2793_p8 }
  0x59   : > { %p2547_p2 = pneg %p2546_p0 }
  0x5b   : > { %p2552_p7 = pnand %p2550_p5, %p2547_p2 }
  0x5d   : > { %2555 = shalt.err (!%p2552_p7)
}
  0x5e   : > { %s2556_s21 = scalar_lea.vmem %s304_s25, 1024  ;;  %p2564_p11 = scmp.lt.s32.totalorder %s304_s25, %s304_s25 }
  0x5f   : > { %p2557_p9 = scmp.ne.s32.totalorder %s304_s25, %s2556_s21  ;;  %p2565_p12 = scmp.lt.s32.totalorder %s2556_s21, %s2556_s21 }
  0x61   : > { %p2559_p3 = pnand %p2557_p9, %p2793_p8  ;;  %p2566_p1 = por %p2565_p12, %p2564_p11 }
  0x63   : > { %p2560_p10 = pneg %p2559_p3 }
  0x65   : > { %p2567_p4 = pnand %p2566_p1, %p2560_p10 }
  0x67   : > { %2570 = shalt.err (!%p2567_p4)
}
  0x68   : > { %s3372_s23 = smov 128   ;;  %s2571_s13 = scalar_lea.hbm %s3362_s8, 16 }
  0x69   : > { %2390 = dma.hbm_to_vmem [thread:$0]  (!%p2777_p6), %s3361_s7, 1024, %s304_s25, [#allocation9], %s3372_s23, %s3372_s23, %s2681_s20  }
  0x6a   : > { %p2572_p1 = scmp.ne.s32.totalorder %s3362_s8, %s2571_s13  ;;  %p2578_p0 = scmp.lt.u32.totalorder %s2571_s13, %s3362_s8 }
  0x6c   : > { %p2574_p4 = pnand %p2572_p1, %p2793_p8 }
  0x6e   : > { %p2575_p13 = pneg %p2574_p4 }
  0x70   : > { %p2580_p2 = pnand %p2578_p0, %p2575_p13 }
  0x72   : > { %2583 = shalt.err (!%p2580_p2)
}
  0x73   : > { %s2584_s21 = scalar_lea.vmem %s318_s28, 16  ;;  %s2591_s25 = scalar_lea.vmem %s318_s28, 32 }
  0x74   : > { %p2585_p5 = scmp.ne.s32.totalorder %s318_s28, %s2584_s21  ;;  %p2592_p3 = scmp.lt.s32.totalorder %s318_s28, %s318_s28 }
  0x75   : > { %p2593_p10 = scmp.lt.s32.totalorder %s2591_s25, %s2584_s21 }
  0x76   : > { %p2587_p7 = pnand %p2585_p5, %p2793_p8 }
  0x77   : > { %p2594_p11 = por %p2593_p10, %p2592_p3 }
  0x78   : > { %p2588_p9 = pneg %p2587_p7 }
  0x7a   : > { %p2595_p12 = pnand %p2594_p11, %p2588_p9 }
  0x7c   : > { %2598 = shalt.err (!%p2595_p12)
}
  0x7d   : > { %2393 = dma.hbm_to_vmem [thread:$0]  (!%p2777_p6), %s3362_s8, 16, %s318_s28, [#allocation12]  }
  0x7e   : > { %s2905_s27 = sadd.s32 1, %s2675_s12   ;;  %s58_s26 = sadd.s32 1, %s2671_s11 }
  0x7f   : > { %s55_s19 = ssub.s32 %s2675_s12, %s2905_s27  ;;  %p65_p1 = scmp.ne.s32.totalorder %s2671_s11, %s2667_s10 }
  0x80   : > { %p56_p8 = scmp.eq.s32.totalorder %s55_s19, 0  ;;  %p66_p4 = scmp.eq.s32.totalorder %s2675_s12, 0 }
  0x81   : > { %p71_p13 = scmp.ne.s32.totalorder %s2667_s10, %s2663_s30  ;;  %p3373_p2 = scmp.eq.s32.totalorder %s2761_s15, 0 }
  0x82   : > { %s2916_s29 = scalar_select %p56_p8, %s2671_s11, %s58_s26  }
  0x83   : > { %p67_p0 = por %p66_p4, %p65_p1  ;;  %p2920_p5 = por %p3373_p2, %p71_p13 }
  0x84   : > { %p2403_p7 = scmp.lt.s32.totalorder %s2675_s12, 4  ;;  %s337_s14 = sand.u32 1, %s2671_s11  }
  0x85   : > { %s1666_s28 = sshll.u32 %s337_s14, 11  ;;  %s1689_s18 = sshll.u32 %s2675_s12, 15 }
  0x86   : > { %s2930_s21 = scalar_lea.hbm %s3355_s1, %s1689_s18  ;;  %s341_s30 = scalar_lea.vmem [#allocation3], %s1666_s28 }
  0x87   : > { %s348_s25 = sshll.u32 %s341_s30, 4  ;;  %p2934_p6 = pnand %p2403_p7, %p67_p0  ;;  %s2932_s25 = int_to_ptr.vmem [resolvable:$true] %s348_s25 }
  0x88   : > { %s2938_s12 = scalar_lea.sflag [#allocation4], %s337_s14  ;;  %s2599_s24 = scalar_lea.hbm %s2930_s21, 32768 }
  0x89   : > { %p2600_p9 = scmp.ne.s32.totalorder %s2930_s21, %s2599_s24  ;;  %p2601_p3 = pneg %p2934_p6 }
  0x8a   : > { %s2604_s28 = scalar_lea.hbm %s3355_s1, 131072  ;;  %p2605_p12 = scmp.lt.u32.totalorder %s2930_s21, %s3355_s1 }
  0x8b   : > { %p2602_p10 = pnand %p2601_p3, %p2600_p9  ;;  %p2606_p8 = scmp.lt.u32.totalorder %s2604_s28, %s2599_s24 }
  0x8c   : > { %p2608_p4 = scmp.lt.u32.totalorder %s2599_s24, %s2930_s21 }
  0x8d   : > { %p2603_p11 = pneg %p2602_p10  ;;  %p2607_p1 = por %p2606_p8, %p2605_p12 }
  0x8f   : > { %p2609_p13 = por %p2608_p4, %p2607_p1 }
  0x91   : > { %p2610_p0 = pnand %p2609_p13, %p2603_p11 }
  0x93   : > { %2613 = shalt.err (!%p2610_p0)
}
  0x94   : > { %s2614_s14 = scalar_lea.vmem %s2932_s25, 32768  ;;  %s2684_s9 = smov [#allocation3]  }
  0x95   : > { %p2615_p2 = scmp.ne.s32.totalorder %s2932_s25, %s2614_s14  ;;  %s2619_s30 = sshll.u32 %s2684_s9, 4  ;;  %s2620_s30 = int_to_ptr.vmem [resolvable:$false] %s2619_s30 }
  0x96   : > { %s2621_s19 = scalar_lea.vmem %s2620_s30, 65536  ;;  %p2622_p10 = scmp.lt.s32.totalorder %s2932_s25, %s2620_s30 }
  0x97   : > { %p2617_p7 = pnand %p2615_p2, %p2601_p3  ;;  %p2623_p12 = scmp.lt.s32.totalorder %s2621_s19, %s2614_s14 }
  0x99   : > { %p2618_p9 = pneg %p2617_p7  ;;  %p2624_p8 = por %p2623_p12, %p2622_p10 }
  0x9b   : > { %p2625_p1 = pnand %p2624_p8, %p2618_p9 }
  0x9d   : > { %2628 = shalt.err (!%p2625_p1)
}
  0x9e   : > { %2397 = dma.hbm_to_vmem [thread:$0]  (!%p2934_p6), %s2930_s21, 32768, %s2932_s25, %s2938_s12, %s3372_s23, %s3372_s23, %s2681_s20  }
  0x9f   : > { %p3376_p3 = scmp.ne.s32.totalorder %s3369_s16, 0 }
  0xa0   : > { %s362_s24 = sand.u32 (!%p3376_p3), 1, %s2667_s10  }
  0xa1   : > { %360 = sbr.rel (%p3376_p3) target bundleno = 1112 (0x458), region = 56  ;;  %s1670_s26 = sshll.u32 (!%p3376_p3), %s362_s24, 11 }
  0xa2   : > { %s363_s28 = scalar_lea.sflag (!%p3376_p3), [#allocation4], %s362_s24  ;;  %s2972_s18 = scalar_lea.vmem (!%p3376_p3), [#allocation3], %s1670_s26 }
  0xa8   : > { %2646 = dma.done.wait (%p2920_p5), %s363_s28, 32768  }
  0xa9   : > { %2648 = vsyncadd (%p2920_p5), %s363_s28, 4294934528  ;;  %p3377_p11 = scmp.eq.s32.totalorder %s2761_s15, 0 }
  0xab   : > { %2650 = dma.done.wait (%p3377_p11), [#allocation6], 272   ;;  %p3378_p6 = pmov %p3377_p11 }
  0xad   : > { %2652 = vsyncadd (%p3378_p6), [#allocation6], 4294967024  ;;  %p3379_p4 = pmov %p3378_p6 }
  0xaf   : > { %2654 = dma.done.wait (%p3379_p4), [#allocation9], 1040   ;;  %p3380_p13 = pmov %p3379_p4 }
  0xb0   : > { %p3381_p0 = pmov %p3379_p4 }
  0xb1   : > { %2656 = vsyncadd (%p3380_p13), [#allocation9], 4294966256 }
  0xb2   : > { %2658 = dma.done.wait (%p3381_p0), [#allocation12], 16   ;;  %p3382_p2 = pmov %p3381_p0 }
  0xb3   : > { %s1676_s16 = sshll.u32 %s2761_s15, 4  ;;  %p3383_p7 = scmp.ne.s32.totalorder %s2761_s15, 0 }
  0xb4   : > { %2660 = vsyncadd (%p3382_p2), [#allocation12], 4294967280  ;;  %p422_p5 = scmp.lt.s32.totalorder %s1676_s16, 63  ;;  %v2685_v0 = vmov (!%p3383_p7), 0.0  }
  0xb5   : > { %431 = sbr.rel (%p3383_p7) target bundleno = 188 (0xbc), region = 84  ;;  %432 = vst [vmem:[#allocation2] sm:$0xff] (!%p3383_p7), %v2685_v0 }
  0xb6   : > { %s3390_s16 = smov (!%p422_p5, %s1676_s16), 63 }
  0xb7   : > { %s1677_s20 = sshll.u32 %s3390_s16, 3 }
  0xb8   : > { %s2994_s21 = scalar_lea.vmem %s3354_s0, %s1677_s20 }
  0xbc PF: > { %v466_v1 = vld [vmem:[%s2972_s18 + $0x80] sm:$0xff]  ;;  %v467_v2 = vld [vmem:[%s2972_s18 + $0x88] sm:$0xff]  ;;  %v468_v12 = vld [vmem:[%s2972_s18 + $0x90] sm:$0xff]  ;;  %p1679_p9 = scmp.ne.s32.totalorder %s2761_s15, 3 }
  0xbd   : > { %v498_v3 = vld [vmem:[%s2972_s18 + $0x180] sm:$0xff]  ;;  %v2060_v4 = vpack.c.bf16 %v467_v2, %v466_v1  ;;  %v499_v5 = vld [vmem:[%s2972_s18 + $0x188] sm:$0xff]  ;;  %v469_v14 = vld [vmem:[%s2972_s18 + $0x98] sm:$0xff]  ;;  %vm1280_vm0 = vcmask (!%p1679_p9), 1040384   ;;  %vm2687_vm1 = vmmov (!%p1679_p9), 1   ;;  %vm2688_vm3 = vmmov (!%p1679_p9), 0  }
  0xbe   : > { %v450_v6 = vld [vmem:[%s2972_s18] sm:$0xff]  ;;  %v451_v7 = vld [vmem:[%s2972_s18 + $0x8] sm:$0xff]  ;;  %v2092_v8 = vpack.c.bf16 %v499_v5, %v498_v3  ;;  %v500_v15 = vld [vmem:[%s2972_s18 + $0x190] sm:$0xff]  ;;  %v2064_v17 = vpack.c.bf16 %v469_v14, %v468_v12  ;;  %vm1276_vm4 = vcmask (!%p1679_p9), 72704   ;;  %vm1473_vm5 = vcmask (!%p1679_p9), 523264   ;;  %s3384_s25 = sld [smem:[#allocation17_spill]] (!%p1679_p9) }
  0xbf   : > { %v2062_v9 = vpack.c.bf16 %v451_v7, %v450_v6  ;;  %v482_v10 = vld [vmem:[%s2972_s18 + $0x100] sm:$0xff]  ;;  %v483_v11 = vld [vmem:[%s2972_s18 + $0x108] sm:$0xff]  ;;  %2061 = vmatprep.subr.bf16.mxu0 %v2060_v4  ;;  %v501_v16 = vld [vmem:[%s2972_s18 + $0x198] sm:$0xff] }
  0xc0   : > { %v2094_v13 = vpack.c.bf16 %v483_v11, %v482_v10  ;;  %2093 = vmatprep.subr.bf16.mxu1 %v2092_v8  ;;  %v2096_v18 = vpack.c.bf16 %v501_v16, %v500_v15  ;;  %v452_v19 = vld [vmem:[%s2972_s18 + $0x10] sm:$0xff]  ;;  %v453_v20 = vld [vmem:[%s2972_s18 + $0x18] sm:$0xff]  ;;  %v470_v24 = vld [vmem:[%s2972_s18 + $0xa0] sm:$0xff] }
  0xc1   : > { %2063 = vmatpush3.bf16.msra.mxu0 %v2062_v9  ;;  %v484_v21 = vld [vmem:[%s2972_s18 + $0x110] sm:$0xff]  ;;  %v2066_v22 = vpack.c.bf16 %v453_v20, %v452_v19  ;;  %v485_v23 = vld [vmem:[%s2972_s18 + $0x118] sm:$0xff]  ;;  %v471_v25 = vld [vmem:[%s2972_s18 + $0xa8] sm:$0xff] }
  0xc2   : > { %2095 = vmatpush3.bf16.msra.mxu1 %v2094_v13  ;;  %2065 = vmatprep.subr.bf16.mxu0 %v2064_v17  ;;  %v2098_v26 = vpack.c.bf16 %v485_v23, %v484_v21  ;;  %v2068_v27 = vpack.c.bf16 %v471_v25, %v470_v24  ;;  %v502_v28 = vld [vmem:[%s2972_s18 + $0x1a0] sm:$0xff]  ;;  %v503_v29 = vld [vmem:[%s2972_s18 + $0x1a8] sm:$0xff]  ;;  %v472_v36 = vld [vmem:[%s2972_s18 + $0xb0] sm:$0xff] }
  0xc3   : > { %2097 = vmatprep.subr.bf16.mxu1 %v2096_v18  ;;  %v454_v30 = vld [vmem:[%s2972_s18 + $0x20] sm:$0xff]  ;;  %v2100_v31 = vpack.c.bf16 %v503_v29, %v502_v28  ;;  %v455_v32 = vld [vmem:[%s2972_s18 + $0x28] sm:$0xff]  ;;  %v473_v37 = vld [vmem:[%s2972_s18 + $0xb8] sm:$0xff] }
  0xc4   : > { %v486_v33 = vld [vmem:[%s2972_s18 + $0x120] sm:$0xff]  ;;  %v487_v34 = vld [vmem:[%s2972_s18 + $0x128] sm:$0xff]  ;;  %v2070_v35 = vpack.c.bf16 %v455_v32, %v454_v30  ;;  %v504_v38 = vld [vmem:[%s2972_s18 + $0x1b0] sm:$0xff]  ;;  %v2072_v40 = vpack.c.bf16 %v473_v37, %v472_v36 }
  0xc5   : > { %2067 = vmatpush3.bf16.msra.mxu0 %v2066_v22  ;;  %v2102_v39 = vpack.c.bf16 %v487_v34, %v486_v33  ;;  %v505_v41 = vld [vmem:[%s2972_s18 + $0x1b8] sm:$0xff]  ;;  %v456_v42 = vld [vmem:[%s2972_s18 + $0x30] sm:$0xff]  ;;  %v474_v47 = vld [vmem:[%s2972_s18 + $0xc0] sm:$0xff] }
  0xc6   : > { %2099 = vmatpush3.bf16.msra.mxu1 %v2098_v26  ;;  %2069 = vmatprep.subr.bf16.mxu0 %v2068_v27  ;;  %v457_v43 = vld [vmem:[%s2972_s18 + $0x38] sm:$0xff]  ;;  %v2104_v44 = vpack.c.bf16 %v505_v41, %v504_v38  ;;  %v488_v45 = vld [vmem:[%s2972_s18 + $0x130] sm:$0xff]  ;;  %v475_v48 = vld [vmem:[%s2972_s18 + $0xc8] sm:$0xff] }
  0xc7   : > { %2101 = vmatprep.subr.bf16.mxu1 %v2100_v31  ;;  %v489_v46 = vld [vmem:[%s2972_s18 + $0x138] sm:$0xff]  ;;  %v506_v49 = vld [vmem:[%s2972_s18 + $0x1c0] sm:$0xff]  ;;  %v507_v50 = vld [vmem:[%s2972_s18 + $0x1c8] sm:$0xff]  ;;  %v2074_v51 = vpack.c.bf16 %v457_v43, %v456_v42  ;;  %v2076_v53 = vpack.c.bf16 %v475_v48, %v474_v47 }
  0xc8   : > { %v2106_v52 = vpack.c.bf16 %v489_v46, %v488_v45  ;;  %v458_v54 = vld [vmem:[%s2972_s18 + $0x40] sm:$0xff]  ;;  %v459_v55 = vld [vmem:[%s2972_s18 + $0x48] sm:$0xff]  ;;  %v2108_v57 = vpack.c.bf16 %v507_v50, %v506_v49  ;;  %v476_v59 = vld [vmem:[%s2972_s18 + $0xd0] sm:$0xff] }
  0xc9   : > { %2071 = vmatpush3.bf16.msra.mxu0 %v2070_v35  ;;  %v490_v56 = vld [vmem:[%s2972_s18 + $0x140] sm:$0xff]  ;;  %v491_v58 = vld [vmem:[%s2972_s18 + $0x148] sm:$0xff]  ;;  %v477_v60 = vld [vmem:[%s2972_s18 + $0xd8] sm:$0xff]  ;;  %v2078_v63 = vpack.c.bf16 %v459_v55, %v458_v54 }
  0xca   : > { %2103 = vmatpush3.bf16.msra.mxu1 %v2102_v39  ;;  %2073 = vmatprep.subr.bf16.mxu0 %v2072_v40  ;;  %v508_v61 = vld [vmem:[%s2972_s18 + $0x1d0] sm:$0xff]  ;;  %v509_v62 = vld [vmem:[%s2972_s18 + $0x1d8] sm:$0xff]  ;;  %v2110_v0 = vpack.c.bf16 %v491_v58, %v490_v56  ;;  %v2080_v1 = vpack.c.bf16 %v477_v60, %v476_v59  ;;  %v478_v7 = vld [vmem:[%s2972_s18 + $0xe0] sm:$0xff] }
  0xcb   : > { %2105 = vmatprep.subr.bf16.mxu1 %v2104_v44  ;;  %v460_v2 = vld [vmem:[%s2972_s18 + $0x50] sm:$0xff]  ;;  %v461_v3 = vld [vmem:[%s2972_s18 + $0x58] sm:$0xff]  ;;  %v2112_v5 = vpack.c.bf16 %v509_v62, %v508_v61  ;;  %v479_v8 = vld [vmem:[%s2972_s18 + $0xe8] sm:$0xff] }
  0xcc   : > { %v492_v4 = vld [vmem:[%s2972_s18 + $0x150] sm:$0xff]  ;;  %v493_v6 = vld [vmem:[%s2972_s18 + $0x158] sm:$0xff]  ;;  %v510_v9 = vld [vmem:[%s2972_s18 + $0x1e0] sm:$0xff]  ;;  %v2082_v11 = vpack.c.bf16 %v461_v3, %v460_v2  ;;  %v2084_v15 = vpack.c.bf16 %v479_v8, %v478_v7 }
  0xcd   : > { %2075 = vmatpush3.bf16.msra.mxu0 %v2074_v51  ;;  %v511_v10 = vld [vmem:[%s2972_s18 + $0x1e8] sm:$0xff]  ;;  %v462_v12 = vld [vmem:[%s2972_s18 + $0x60] sm:$0xff]  ;;  %v2114_v14 = vpack.c.bf16 %v493_v6, %v492_v4  ;;  %v437_v18 = vld [vmem:[%s2994_s21 + $0x18] sm:$0xff] }
  0xce   : > { %2107 = vmatpush3.bf16.msra.mxu1 %v2106_v52  ;;  %2077 = vmatprep.subr.bf16.mxu0 %v2076_v53  ;;  %v463_v13 = vld [vmem:[%s2972_s18 + $0x68] sm:$0xff]  ;;  %v494_v16 = vld [vmem:[%s2972_s18 + $0x160] sm:$0xff]  ;;  %v2116_v19 = vpack.c.bf16 %v511_v10, %v510_v9  ;;  %v480_v21 = vld [vmem:[%s2972_s18 + $0xf0] sm:$0xff] }
  0xcf   : > { %2109 = vmatprep.subr.bf16.mxu1 %v2108_v57  ;;  %v435_v17 = vld [vmem:[%s2994_s21 + $0x8] sm:$0xff]  ;;  %v495_v20 = vld [vmem:[%s2972_s18 + $0x168] sm:$0xff]  ;;  %v481_v22 = vld [vmem:[%s2972_s18 + $0xf8] sm:$0xff]  ;;  %840 = vmatprep.mubr.f32.mxu1 %v437_v18  ;;  %v2086_v25 = vpack.c.bf16 %v463_v13, %v462_v12 }
  0xd0   : > { %770 = vmatprep.mubr.f32.mxu0 %v435_v17  ;;  %v512_v23 = vld [vmem:[%s2972_s18 + $0x1f0] sm:$0xff]  ;;  %v513_v24 = vld [vmem:[%s2972_s18 + $0x1f8] sm:$0xff]  ;;  %v2118_v26 = vpack.c.bf16 %v495_v20, %v494_v16  ;;  %v2088_v27 = vpack.c.bf16 %v481_v22, %v480_v21  ;;  %v530_v33 = vld [vmem:[%s2972_s18 + $0x280] sm:$0xff] }
  0xd1   : > { %2079 = vmatpush3.bf16.msra.mxu0 %v2078_v63  ;;  %v464_v28 = vld [vmem:[%s2972_s18 + $0x70] sm:$0xff]  ;;  %v465_v29 = vld [vmem:[%s2972_s18 + $0x78] sm:$0xff]  ;;  %v2120_v31 = vpack.c.bf16 %v513_v24, %v512_v23  ;;  %v531_v34 = vld [vmem:[%s2972_s18 + $0x288] sm:$0xff] }
  0xd2   : > { %2111 = vmatpush3.bf16.msra.mxu1 %v2110_v0  ;;  %2081 = vmatprep.subr.bf16.mxu0 %v2080_v1  ;;  %v496_v30 = vld [vmem:[%s2972_s18 + $0x170] sm:$0xff]  ;;  %v497_v32 = vld [vmem:[%s2972_s18 + $0x178] sm:$0xff]  ;;  %v562_v35 = vld [vmem:[%s2972_s18 + $0x380] sm:$0xff]  ;;  %v2090_v37 = vpack.c.bf16 %v465_v29, %v464_v28  ;;  %v2124_v39 = vpack.c.bf16 %v531_v34, %v530_v33 }
  0xd3   : > { %2113 = vmatprep.subr.bf16.mxu1 %v2112_v5  ;;  %v563_v36 = vld [vmem:[%s2972_s18 + $0x388] sm:$0xff]  ;;  %v2122_v38 = vpack.c.bf16 %v497_v32, %v496_v30  ;;  %v514_v40 = vld [vmem:[%s2972_s18 + $0x200] sm:$0xff]  ;;  %v532_v45 = vld [vmem:[%s2972_s18 + $0x290] sm:$0xff] }
  0xd4   : > { %v515_v41 = vld [vmem:[%s2972_s18 + $0x208] sm:$0xff]  ;;  %v546_v42 = vld [vmem:[%s2972_s18 + $0x300] sm:$0xff]  ;;  %v2156_v43 = vpack.c.bf16 %v563_v36, %v562_v35  ;;  %v533_v46 = vld [vmem:[%s2972_s18 + $0x298] sm:$0xff] }
  0xd5   : > { %2083 = vmatpush3.bf16.msra.mxu0 %v2082_v11  ;;  %v547_v44 = vld [vmem:[%s2972_s18 + $0x308] sm:$0xff]  ;;  %v564_v47 = vld [vmem:[%s2972_s18 + $0x390] sm:$0xff]  ;;  %v565_v48 = vld [vmem:[%s2972_s18 + $0x398] sm:$0xff]  ;;  %v2126_v51 = vpack.c.bf16 %v515_v41, %v514_v40  ;;  %v2128_v53 = vpack.c.bf16 %v533_v46, %v532_v45 }
  0xd6   : > { %2115 = vmatpush3.bf16.msra.mxu1 %v2114_v14  ;;  %2085 = vmatprep.subr.bf16.mxu0 %v2084_v15  ;;  %v434_v49 = vld [vmem:[%s2994_s21] sm:$0xff]  ;;  %v436_v50 = vld [vmem:[%s2994_s21 + $0x10] sm:$0xff]  ;;  %v2158_v52 = vpack.c.bf16 %v547_v44, %v546_v42  ;;  %v516_v54 = vld [vmem:[%s2972_s18 + $0x210] sm:$0xff]  ;;  %v2160_v57 = vpack.c.bf16 %v565_v48, %v564_v47 }
  0xd7   : > { %2117 = vmatprep.subr.bf16.mxu1 %v2116_v19  ;;  %v517_v55 = vld [vmem:[%s2972_s18 + $0x218] sm:$0xff]  ;;  %v548_v56 = vld [vmem:[%s2972_s18 + $0x310] sm:$0xff]  ;;  %v534_v59 = vld [vmem:[%s2972_s18 + $0x2a0] sm:$0xff] }
  0xd8   : > { %v549_v58 = vld [vmem:[%s2972_s18 + $0x318] sm:$0xff]  ;;  %v535_v60 = vld [vmem:[%s2972_s18 + $0x2a8] sm:$0xff]  ;;  %v566_v61 = vld [vmem:[%s2972_s18 + $0x3a0] sm:$0xff]  ;;  %v2130_v63 = vpack.c.bf16 %v517_v55, %v516_v54 }
  0xd9   : > { %2087 = vmatpush3.bf16.msra.mxu0 %v2086_v25  ;;  %v567_v62 = vld [vmem:[%s2972_s18 + $0x3a8] sm:$0xff]  ;;  %v2162_v0 = vpack.c.bf16 %v549_v58, %v548_v56  ;;  %v2132_v1 = vpack.c.bf16 %v535_v60, %v534_v59  ;;  %v518_v2 = vld [vmem:[%s2972_s18 + $0x220] sm:$0xff]  ;;  %v536_v7 = vld [vmem:[%s2972_s18 + $0x2b0] sm:$0xff] }
  0xda   : > { %2119 = vmatpush3.bf16.msra.mxu1 %v2118_v26  ;;  %2089 = vmatprep.subr.bf16.mxu0 %v2088_v27  ;;  %v519_v3 = vld [vmem:[%s2972_s18 + $0x228] sm:$0xff]  ;;  %v550_v4 = vld [vmem:[%s2972_s18 + $0x320] sm:$0xff]  ;;  %v2164_v5 = vpack.c.bf16 %v567_v62, %v566_v61  ;;  %v537_v8 = vld [vmem:[%s2972_s18 + $0x2b8] sm:$0xff] }
  0xdb   : > { %2121 = vmatprep.subr.bf16.mxu1 %v2120_v31  ;;  %v551_v6 = vld [vmem:[%s2972_s18 + $0x328] sm:$0xff]  ;;  %v568_v9 = vld [vmem:[%s2972_s18 + $0x3b0] sm:$0xff]  ;;  %v569_v10 = vld [vmem:[%s2972_s18 + $0x3b8] sm:$0xff]  ;;  %v2134_v11 = vpack.c.bf16 %v519_v3, %v518_v2  ;;  %v2136_v13 = vpack.c.bf16 %v537_v8, %v536_v7 }
  0xdc   : > { %v2166_v12 = vpack.c.bf16 %v551_v6, %v550_v4  ;;  %v520_v14 = vld [vmem:[%s2972_s18 + $0x230] sm:$0xff]  ;;  %v521_v15 = vld [vmem:[%s2972_s18 + $0x238] sm:$0xff]  ;;  %v2168_v17 = vpack.c.bf16 %v569_v10, %v568_v9  ;;  %v538_v19 = vld [vmem:[%s2972_s18 + $0x2c0] sm:$0xff] }
  0xdd   : > { %2091 = vmatpush3.bf16.msra.mxu0 %v2090_v37  ;;  %v552_v16 = vld [vmem:[%s2972_s18 + $0x330] sm:$0xff]  ;;  %v553_v18 = vld [vmem:[%s2972_s18 + $0x338] sm:$0xff]  ;;  %v539_v20 = vld [vmem:[%s2972_s18 + $0x2c8] sm:$0xff]  ;;  %v2138_v23 = vpack.c.bf16 %v521_v15, %v520_v14 }
  0xde   : > { %2123 = vmatpush3.bf16.msra.mxu1 %v2122_v38  ;;  %2125 = vmatprep.subr.bf16.mxu0 %v2124_v39  ;;  %v570_v21 = vld [vmem:[%s2972_s18 + $0x3c0] sm:$0xff]  ;;  %v571_v22 = vld [vmem:[%s2972_s18 + $0x3c8] sm:$0xff]  ;;  %v2170_v26 = vpack.c.bf16 %v553_v18, %v552_v16  ;;  %v2140_v27 = vpack.c.bf16 %v539_v20, %v538_v19  ;;  %v441_v30 = vld [vmem:[%s2994_s21 + $0x38] sm:$0xff] }
  0xdf   : > { %2157 = vmatprep.subr.bf16.mxu1 %v2156_v43  ;;  %v522_v24 = vld [vmem:[%s2972_s18 + $0x240] sm:$0xff]  ;;  %v523_v28 = vld [vmem:[%s2972_s18 + $0x248] sm:$0xff]  ;;  %v2172_v31 = vpack.c.bf16 %v571_v22, %v570_v21  ;;  %v540_v33 = vld [vmem:[%s2972_s18 + $0x2d0] sm:$0xff] }
  0xe0   : > { %771 = vmatmul.mubr.f32.vlgmr.msra.gmra.mrb[0].mxu0 %v434_v49  ;;  %v439_v25 = vld [vmem:[%s2994_s21 + $0x28] sm:$0xff]  ;;  %v555_v32 = vld [vmem:[%s2972_s18 + $0x348] sm:$0xff]  ;;  %v541_v34 = vld [vmem:[%s2972_s18 + $0x2d8] sm:$0xff]  ;;  %v2142_v37 = vpack.c.bf16 %v523_v28, %v522_v24 }
  0xe1   : > { %841 = vmatmul.mubr.f32.vlgmr.msra.gmra.mrb[0].mxu1 %v436_v50  ;;  %2127 = vmatpush3.bf16.msra.mxu0 %v2126_v51  ;;  %v554_v29 = vld [vmem:[%s2972_s18 + $0x340] sm:$0xff]  ;;  %v572_v35 = vld [vmem:[%s2972_s18 + $0x3d0] sm:$0xff]  ;;  %v573_v36 = vld [vmem:[%s2972_s18 + $0x3d8] sm:$0xff]  ;;  %v2144_v39 = vpack.c.bf16 %v541_v34, %v540_v33 }
  0xe2   : > { %2159 = vmatpush3.bf16.msra.mxu1 %v2158_v52  ;;  %2129 = vmatprep.subr.bf16.mxu0 %v2128_v53  ;;  %v2174_v38 = vpack.c.bf16 %v555_v32, %v554_v29  ;;  %v524_v40 = vld [vmem:[%s2972_s18 + $0x250] sm:$0xff]  ;;  %v525_v41 = vld [vmem:[%s2972_s18 + $0x258] sm:$0xff]  ;;  %v2176_v43 = vpack.c.bf16 %v573_v36, %v572_v35  ;;  %v542_v45 = vld [vmem:[%s2972_s18 + $0x2e0] sm:$0xff] }
  0xe3   : > { %2161 = vmatprep.subr.bf16.mxu1 %v2160_v57  ;;  %910 = vmatprep.mubr.f32.mxu0 %v439_v25  ;;  %v556_v42 = vld [vmem:[%s2972_s18 + $0x350] sm:$0xff]  ;;  %v557_v44 = vld [vmem:[%s2972_s18 + $0x358] sm:$0xff]  ;;  %v543_v46 = vld [vmem:[%s2972_s18 + $0x2e8] sm:$0xff]  ;;  %v2146_v49 = vpack.c.bf16 %v525_v41, %v524_v40 }
  0xe4   : > { %980 = vmatprep.mubr.f32.mxu1 %v441_v30  ;;  %v574_v47 = vld [vmem:[%s2972_s18 + $0x3e0] sm:$0xff]  ;;  %v575_v48 = vld [vmem:[%s2972_s18 + $0x3e8] sm:$0xff]  ;;  %v2178_v50 = vpack.c.bf16 %v557_v44, %v556_v42  ;;  %v2148_v51 = vpack.c.bf16 %v543_v46, %v542_v45  ;;  %v544_v57 = vld [vmem:[%s2972_s18 + $0x2f0] sm:$0xff] }
  0xe5   : > { %2131 = vmatpush3.bf16.msra.mxu0 %v2130_v63  ;;  %v526_v52 = vld [vmem:[%s2972_s18 + $0x260] sm:$0xff]  ;;  %v527_v53 = vld [vmem:[%s2972_s18 + $0x268] sm:$0xff]  ;;  %v2180_v55 = vpack.c.bf16 %v575_v48, %v574_v47  ;;  %v545_v58 = vld [vmem:[%s2972_s18 + $0x2f8] sm:$0xff] }
  0xe6   : > { %2163 = vmatpush3.bf16.msra.mxu1 %v2162_v0  ;;  %2133 = vmatprep.subr.bf16.mxu0 %v2132_v1  ;;  %v558_v54 = vld [vmem:[%s2972_s18 + $0x360] sm:$0xff]  ;;  %v559_v56 = vld [vmem:[%s2972_s18 + $0x368] sm:$0xff]  ;;  %v576_v59 = vld [vmem:[%s2972_s18 + $0x3f0] sm:$0xff]  ;;  %v2150_v61 = vpack.c.bf16 %v527_v53, %v526_v52  ;;  %v2152_v63 = vpack.c.bf16 %v545_v58, %v544_v57 }
  0xe7   : > { %2165 = vmatprep.subr.bf16.mxu1 %v2164_v5  ;;  %v577_v60 = vld [vmem:[%s2972_s18 + $0x3f8] sm:$0xff]  ;;  %v2182_v62 = vpack.c.bf16 %v559_v56, %v558_v54  ;;  %v528_v0 = vld [vmem:[%s2972_s18 + $0x270] sm:$0xff]  ;;  %v594_v5 = vld [vmem:[%s2972_s18 + $0x480] sm:$0xff] }
  0xe8   : > { %v529_v1 = vld [vmem:[%s2972_s18 + $0x278] sm:$0xff]  ;;  %v560_v2 = vld [vmem:[%s2972_s18 + $0x370] sm:$0xff]  ;;  %v2184_v3 = vpack.c.bf16 %v577_v60, %v576_v59  ;;  %v595_v6 = vld [vmem:[%s2972_s18 + $0x488] sm:$0xff] }
  0xe9   : > { %2135 = vmatpush3.bf16.msra.mxu0 %v2134_v11  ;;  %v561_v4 = vld [vmem:[%s2972_s18 + $0x378] sm:$0xff]  ;;  %v626_v7 = vld [vmem:[%s2972_s18 + $0x580] sm:$0xff]  ;;  %v627_v8 = vld [vmem:[%s2972_s18 + $0x588] sm:$0xff]  ;;  %v2154_v9 = vpack.c.bf16 %v529_v1, %v528_v0  ;;  %v2188_v11 = vpack.c.bf16 %v595_v6, %v594_v5 }
  0xea   : > { %2167 = vmatpush3.bf16.msra.mxu1 %v2166_v12  ;;  %2137 = vmatprep.subr.bf16.mxu0 %v2136_v13  ;;  %v2186_v10 = vpack.c.bf16 %v561_v4, %v560_v2  ;;  %v578_v12 = vld [vmem:[%s2972_s18 + $0x400] sm:$0xff]  ;;  %v579_v13 = vld [vmem:[%s2972_s18 + $0x408] sm:$0xff]  ;;  %v2220_v15 = vpack.c.bf16 %v627_v8, %v626_v7  ;;  %v597_v18 = vld [vmem:[%s2972_s18 + $0x498] sm:$0xff] }
  0xeb   : > { %2169 = vmatprep.subr.bf16.mxu1 %v2168_v17  ;;  %v610_v14 = vld [vmem:[%s2972_s18 + $0x500] sm:$0xff]  ;;  %v611_v16 = vld [vmem:[%s2972_s18 + $0x508] sm:$0xff]  ;;  %v596_v17 = vld [vmem:[%s2972_s18 + $0x490] sm:$0xff]  ;;  %v2190_v22 = vpack.c.bf16 %v579_v13, %v578_v12 }
  0xec   : > { %v628_v19 = vld [vmem:[%s2972_s18 + $0x590] sm:$0xff]  ;;  %v629_v20 = vld [vmem:[%s2972_s18 + $0x598] sm:$0xff]  ;;  %v2222_v24 = vpack.c.bf16 %v611_v16, %v610_v14  ;;  %v2192_v25 = vpack.c.bf16 %v597_v18, %v596_v17  ;;  %v599_v32 = vld [vmem:[%s2972_s18 + $0x4a8] sm:$0xff] }
  0xed   : > { %2139 = vmatpush3.bf16.msra.mxu0 %v2138_v23  ;;  %v438_v21 = vld [vmem:[%s2994_s21 + $0x20] sm:$0xff]  ;;  %v440_v23 = vld [vmem:[%s2994_s21 + $0x30] sm:$0xff]  ;;  %v612_v28 = vld [vmem:[%s2972_s18 + $0x510] sm:$0xff]  ;;  %v2224_v29 = vpack.c.bf16 %v629_v20, %v628_v19 }
  0xee   : > { %2171 = vmatpush3.bf16.msra.mxu1 %v2170_v26  ;;  %2141 = vmatprep.subr.bf16.mxu0 %v2140_v27  ;;  %v580_v26 = vld [vmem:[%s2972_s18 + $0x410] sm:$0xff]  ;;  %v581_v27 = vld [vmem:[%s2972_s18 + $0x418] sm:$0xff]  ;;  %v630_v33 = vld [vmem:[%s2972_s18 + $0x5a0] sm:$0xff] }
  0xef   : > { %2173 = vmatprep.subr.bf16.mxu1 %v2172_v31  ;;  %v613_v30 = vld [vmem:[%s2972_s18 + $0x518] sm:$0xff]  ;;  %v598_v31 = vld [vmem:[%s2972_s18 + $0x4a0] sm:$0xff]  ;;  %v631_v34 = vld [vmem:[%s2972_s18 + $0x5a8] sm:$0xff]  ;;  %v2194_v36 = vpack.c.bf16 %v581_v27, %v580_v26 }
  0xf0   : > { %v443_v35 = vld [vmem:[%s2994_s21 + $0x48] sm:$0xff]  ;;  %v583_v41 = vld [vmem:[%s2972_s18 + $0x428] sm:$0xff]  ;;  %v600_v45 = vld [vmem:[%s2972_s18 + $0x4b0] sm:$0xff] }
  0xf1   : > { %2143 = vmatpush3.bf16.msra.mxu0 %v2142_v37  ;;  %v445_v37 = vld [vmem:[%s2994_s21 + $0x58] sm:$0xff]  ;;  %v582_v40 = vld [vmem:[%s2972_s18 + $0x420] sm:$0xff]  ;;  %v615_v44 = vld [vmem:[%s2972_s18 + $0x528] sm:$0xff] }
  0xf2   : > { %2175 = vmatpush3.bf16.msra.mxu1 %v2174_v38  ;;  %2145 = vmatprep.subr.bf16.mxu0 %v2144_v39  ;;  %v2226_v38 = vpack.c.bf16 %v613_v30, %v612_v28  ;;  %v2196_v39 = vpack.c.bf16 %v599_v32, %v598_v31  ;;  %v614_v42 = vld [vmem:[%s2972_s18 + $0x520] sm:$0xff]  ;;  %v601_v46 = vld [vmem:[%s2972_s18 + $0x4b8] sm:$0xff]  ;;  %v632_v47 = vld [vmem:[%s2972_s18 + $0x5b0] sm:$0xff] }
  0xf3   : > { %2177 = vmatprep.subr.bf16.mxu1 %v2176_v43  ;;  %v2228_v43 = vpack.c.bf16 %v631_v34, %v630_v33  ;;  %v633_v48 = vld [vmem:[%s2972_s18 + $0x5b8] sm:$0xff]  ;;  %v584_v52 = vld [vmem:[%s2972_s18 + $0x430] sm:$0xff]  ;;  %v602_v57 = vld [vmem:[%s2972_s18 + $0x4c0] sm:$0xff] }
  0xf4   : > { %v585_v53 = vld [vmem:[%s2972_s18 + $0x438] sm:$0xff]  ;;  %v616_v54 = vld [vmem:[%s2972_s18 + $0x530] sm:$0xff]  ;;  %v603_v58 = vld [vmem:[%s2972_s18 + $0x4c8] sm:$0xff] }
  0xf5   : > { %2147 = vmatpush3.bf16.msra.mxu0 %v2146_v49  ;;  %v2198_v49 = vpack.c.bf16 %v583_v41, %v582_v40  ;;  %v617_v56 = vld [vmem:[%s2972_s18 + $0x538] sm:$0xff]  ;;  %v634_v59 = vld [vmem:[%s2972_s18 + $0x5c0] sm:$0xff]  ;;  %v635_v60 = vld [vmem:[%s2972_s18 + $0x5c8] sm:$0xff] }
  0xf6   : > { %2179 = vmatpush3.bf16.msra.mxu1 %v2178_v50  ;;  %2149 = vmatprep.subr.bf16.mxu0 %v2148_v51  ;;  %v2230_v50 = vpack.c.bf16 %v615_v44, %v614_v42  ;;  %v2200_v51 = vpack.c.bf16 %v601_v46, %v600_v45  ;;  %v586_v0 = vld [vmem:[%s2972_s18 + $0x440] sm:$0xff]  ;;  %v587_v1 = vld [vmem:[%s2972_s18 + $0x448] sm:$0xff]  ;;  %v604_v5 = vld [vmem:[%s2972_s18 + $0x4d0] sm:$0xff] }
  0xf7   : > { %2181 = vmatprep.subr.bf16.mxu1 %v2180_v55  ;;  %v2232_v55 = vpack.c.bf16 %v633_v48, %v632_v47  ;;  %v618_v2 = vld [vmem:[%s2972_s18 + $0x540] sm:$0xff]  ;;  %v619_v4 = vld [vmem:[%s2972_s18 + $0x548] sm:$0xff]  ;;  %v605_v6 = vld [vmem:[%s2972_s18 + $0x4d8] sm:$0xff] }
  0xf8   : > { %v636_v7 = vld [vmem:[%s2972_s18 + $0x5d0] sm:$0xff]  ;;  %v637_v8 = vld [vmem:[%s2972_s18 + $0x5d8] sm:$0xff]  ;;  %v606_v17 = vld [vmem:[%s2972_s18 + $0x4e0] sm:$0xff] }
  0xf9   : > { %2151 = vmatpush3.bf16.msra.mxu0 %v2150_v61  ;;  %v2202_v61 = vpack.c.bf16 %v585_v53, %v584_v52  ;;  %v588_v12 = vld [vmem:[%s2972_s18 + $0x450] sm:$0xff]  ;;  %v589_v13 = vld [vmem:[%s2972_s18 + $0x458] sm:$0xff]  ;;  %v607_v18 = vld [vmem:[%s2972_s18 + $0x4e8] sm:$0xff] }
  0xfa   : > { %2183 = vmatpush3.bf16.msra.mxu1 %v2182_v62  ;;  %2153 = vmatprep.subr.bf16.mxu0 %v2152_v63  ;;  %v2234_v62 = vpack.c.bf16 %v617_v56, %v616_v54  ;;  %v2204_v63 = vpack.c.bf16 %v603_v58, %v602_v57  ;;  %v620_v14 = vld [vmem:[%s2972_s18 + $0x550] sm:$0xff]  ;;  %v621_v16 = vld [vmem:[%s2972_s18 + $0x558] sm:$0xff]  ;;  %v638_v19 = vld [vmem:[%s2972_s18 + $0x5e0] sm:$0xff] }
  0xfb   : > { %2185 = vmatprep.subr.bf16.mxu1 %v2184_v3  ;;  %v2236_v3 = vpack.c.bf16 %v635_v60, %v634_v59  ;;  %v639_v20 = vld [vmem:[%s2972_s18 + $0x5e8] sm:$0xff]  ;;  %v622_v26 = vld [vmem:[%s2972_s18 + $0x560] sm:$0xff]  ;;  %v609_v30 = vld [vmem:[%s2972_s18 + $0x4f8] sm:$0xff] }
  0xfc   : > { %v2244_v27 = vpack.c.bf16 %v639_v20, %v638_v19  ;;  %v623_v28 = vld [vmem:[%s2972_s18 + $0x568] sm:$0xff]  ;;  %v640_v31 = vld [vmem:[%s2972_s18 + $0x5f0] sm:$0xff]  ;;  %v641_v32 = vld [vmem:[%s2972_s18 + $0x5f8] sm:$0xff] }
  0xfd   : > { %2155 = vmatpush3.bf16.msra.mxu0 %v2154_v9  ;;  %v2206_v9 = vpack.c.bf16 %v587_v1, %v586_v0  ;;  %v2246_v34 = vpack.c.bf16 %v623_v28, %v622_v26  ;;  %v625_v40 = vld [vmem:[%s2972_s18 + $0x578] sm:$0xff]  ;;  %v658_v41 = vld [vmem:[%s2972_s18 + $0x680] sm:$0xff]  ;;  %v659_v42 = vld [vmem:[%s2972_s18 + $0x688] sm:$0xff] }
  0xfe   : > { %2187 = vmatpush3.bf16.msra.mxu1 %v2186_v10  ;;  %2189 = vmatprep.subr.bf16.mxu0 %v2188_v11  ;;  %v2238_v10 = vpack.c.bf16 %v619_v4, %v618_v2  ;;  %v2208_v11 = vpack.c.bf16 %v605_v6, %v604_v5  ;;  %v691_v44 = vld [vmem:[%s2972_s18 + $0x788] sm:$0xff]  ;;  %v2252_v47 = vpack.c.bf16 %v659_v42, %v658_v41  ;;  %v642_v48 = vld [vmem:[%s2972_s18 + $0x600] sm:$0xff]  ;;  %v660_v53 = vld [vmem:[%s2972_s18 + $0x690] sm:$0xff] }
  0xff   : > { %2221 = vmatprep.subr.bf16.mxu1 %v2220_v15  ;;  %v2240_v15 = vpack.c.bf16 %v637_v8, %v636_v7  ;;  %v675_v52 = vld [vmem:[%s2972_s18 + $0x708] sm:$0xff]  ;;  %v661_v54 = vld [vmem:[%s2972_s18 + $0x698] sm:$0xff]  ;;  %v676_v0 = vld [vmem:[%s2972_s18 + $0x710] sm:$0xff] }
 0x100   : > { %911 = vmatmul.mubr.f32.vlgmr.msra.gmra.mrb[2].mxu0 %v438_v21  ;;  %v2210_v21 = vpack.c.bf16 %v589_v13, %v588_v12  ;;  %v693_v56 = vld [vmem:[%s2972_s18 + $0x798] sm:$0xff]  ;;  %v444_v59 = vld [vmem:[%s2994_s21 + $0x50] sm:$0xff]  ;;  %v694_v5 = vld [vmem:[%s2972_s18 + $0x7a0] sm:$0xff] }
 0x101   : > { %2191 = vmatpush3.bf16.msra.mxu0 %v2190_v22  ;;  %981 = vmatmul.mubr.f32.vlgmr.msra.gmra.mrb[2].mxu1 %v440_v23  ;;  %v2242_v22 = vpack.c.bf16 %v621_v16, %v620_v14  ;;  %v2212_v23 = vpack.c.bf16 %v607_v18, %v606_v17  ;;  %v442_v57 = vld [vmem:[%s2994_s21 + $0x40] sm:$0xff]  ;;  %v663_v4 = vld [vmem:[%s2972_s18 + $0x6a8] sm:$0xff]  ;;  %v447_v7 = vld [vmem:[%s2994_s21 + $0x68] sm:$0xff] }
 0x102   : > { %2223 = vmatpush3.bf16.msra.mxu1 %v2222_v24  ;;  %2193 = vmatprep.subr.bf16.mxu0 %v2192_v25  ;;  %v590_v24 = vld [vmem:[%s2972_s18 + $0x460] sm:$0xff]  ;;  %v591_v25 = vld [vmem:[%s2972_s18 + $0x468] sm:$0xff]  ;;  %v677_v2 = vld [vmem:[%s2972_s18 + $0x718] sm:$0xff] }
 0x103   : > { %2225 = vmatprep.subr.bf16.mxu1 %v2224_v29  ;;  %1050 = vmatprep.mubr.f32.mxu0 %v443_v35  ;;  %v608_v29 = vld [vmem:[%s2972_s18 + $0x4f0] sm:$0xff]  ;;  %v2214_v33 = vpack.c.bf16 %v591_v25, %v590_v24  ;;  %v695_v6 = vld [vmem:[%s2972_s18 + $0x7a8] sm:$0xff]  ;;  %v646_v12 = vld [vmem:[%s2972_s18 + $0x620] sm:$0xff] }
 0x104   : > { %1120 = vmatprep.mubr.f32.mxu1 %v445_v37  ;;  %v2216_v35 = vpack.c.bf16 %v609_v30, %v608_v29  ;;  %v593_v37 = vld [vmem:[%s2972_s18 + $0x478] sm:$0xff]  ;;  %v647_v13 = vld [vmem:[%s2972_s18 + $0x628] sm:$0xff]  ;;  %v678_v14 = vld [vmem:[%s2972_s18 + $0x720] sm:$0xff] }
 0x105   : > { %2195 = vmatpush3.bf16.msra.mxu0 %v2194_v36  ;;  %v592_v36 = vld [vmem:[%s2972_s18 + $0x470] sm:$0xff]  ;;  %v679_v16 = vld [vmem:[%s2972_s18 + $0x728] sm:$0xff]  ;;  %v665_v18 = vld [vmem:[%s2972_s18 + $0x6b8] sm:$0xff] }
 0x106   : > { %2227 = vmatpush3.bf16.msra.mxu1 %v2226_v38  ;;  %2197 = vmatprep.subr.bf16.mxu0 %v2196_v39  ;;  %v624_v38 = vld [vmem:[%s2972_s18 + $0x570] sm:$0xff]  ;;  %v2248_v39 = vpack.c.bf16 %v641_v32, %v640_v31  ;;  %v2218_v45 = vpack.c.bf16 %v593_v37, %v592_v36  ;;  %v697_v20 = vld [vmem:[%s2972_s18 + $0x7b8] sm:$0xff]  ;;  %v666_v29 = vld [vmem:[%s2972_s18 + $0x6c0] sm:$0xff] }
 0x107   : > { %2229 = vmatprep.subr.bf16.mxu1 %v2228_v43  ;;  %v690_v43 = vld [vmem:[%s2972_s18 + $0x780] sm:$0xff]  ;;  %v2250_v46 = vpack.c.bf16 %v625_v40, %v624_v38  ;;  %v664_v17 = vld [vmem:[%s2972_s18 + $0x6b0] sm:$0xff]  ;;  %v649_v25 = vld [vmem:[%s2972_s18 + $0x638] sm:$0xff] }
 0x108   : > { %v696_v19 = vld [vmem:[%s2972_s18 + $0x7b0] sm:$0xff]  ;;  %v681_v28 = vld [vmem:[%s2972_s18 + $0x738] sm:$0xff]  ;;  %v667_v30 = vld [vmem:[%s2972_s18 + $0x6c8] sm:$0xff] }
 0x109   : > { %2199 = vmatpush3.bf16.msra.mxu0 %v2198_v49  ;;  %v643_v49 = vld [vmem:[%s2972_s18 + $0x608] sm:$0xff]  ;;  %v648_v24 = vld [vmem:[%s2972_s18 + $0x630] sm:$0xff]  ;;  %v698_v31 = vld [vmem:[%s2972_s18 + $0x7c0] sm:$0xff] }
 0x10a   : > { %2231 = vmatpush3.bf16.msra.mxu1 %v2230_v50  ;;  %2201 = vmatprep.subr.bf16.mxu0 %v2200_v51  ;;  %v674_v50 = vld [vmem:[%s2972_s18 + $0x700] sm:$0xff]  ;;  %v2284_v51 = vpack.c.bf16 %v691_v44, %v690_v43  ;;  %v2254_v58 = vpack.c.bf16 %v643_v49, %v642_v48  ;;  %v680_v26 = vld [vmem:[%s2972_s18 + $0x730] sm:$0xff]  ;;  %v699_v32 = vld [vmem:[%s2972_s18 + $0x7c8] sm:$0xff] }
 0x10b   : > { %2233 = vmatprep.subr.bf16.mxu1 %v2232_v55  ;;  %v692_v55 = vld [vmem:[%s2972_s18 + $0x790] sm:$0xff]  ;;  %v2286_v60 = vpack.c.bf16 %v675_v52, %v674_v50  ;;  %v650_v36 = vld [vmem:[%s2972_s18 + $0x640] sm:$0xff]  ;;  %v651_v37 = vld [vmem:[%s2972_s18 + $0x648] sm:$0xff] }
 0x10c   : > { %v2288_v1 = vpack.c.bf16 %v693_v56, %v692_v55  ;;  %v682_v38 = vld [vmem:[%s2972_s18 + $0x740] sm:$0xff]  ;;  %v683_v40 = vld [vmem:[%s2972_s18 + $0x748] sm:$0xff]  ;;  %v668_v41 = vld [vmem:[%s2972_s18 + $0x6d0] sm:$0xff] }
 0x10d   : > { %2203 = vmatpush3.bf16.msra.mxu0 %v2202_v61  ;;  %v2256_v61 = vpack.c.bf16 %v661_v54, %v660_v53  ;;  %v669_v42 = vld [vmem:[%s2972_s18 + $0x6d8] sm:$0xff]  ;;  %v700_v43 = vld [vmem:[%s2972_s18 + $0x7d0] sm:$0xff]  ;;  %v670_v53 = vld [vmem:[%s2972_s18 + $0x6e0] sm:$0xff] }
 0x10e   : > { %2235 = vmatpush3.bf16.msra.mxu1 %v2234_v62  ;;  %2205 = vmatprep.subr.bf16.mxu0 %v2204_v63  ;;  %v644_v62 = vld [vmem:[%s2972_s18 + $0x610] sm:$0xff]  ;;  %v645_v63 = vld [vmem:[%s2972_s18 + $0x618] sm:$0xff]  ;;  %v671_v54 = vld [vmem:[%s2972_s18 + $0x6e8] sm:$0xff] }
 0x10f   : > { %2237 = vmatprep.subr.bf16.mxu1 %v2236_v3  ;;  %v662_v3 = vld [vmem:[%s2972_s18 + $0x6a0] sm:$0xff]  ;;  %v2258_v8 = vpack.c.bf16 %v645_v63, %v644_v62  ;;  %v701_v44 = vld [vmem:[%s2972_s18 + $0x7d8] sm:$0xff]  ;;  %v652_v48 = vld [vmem:[%s2972_s18 + $0x650] sm:$0xff] }
 0x110   : > { %v653_v49 = vld [vmem:[%s2972_s18 + $0x658] sm:$0xff]  ;;  %v684_v50 = vld [vmem:[%s2972_s18 + $0x750] sm:$0xff]  ;;  %v702_v55 = vld [vmem:[%s2972_s18 + $0x7e0] sm:$0xff] }
 0x111   : > { %2207 = vmatpush3.bf16.msra.mxu0 %v2206_v9  ;;  %v449_v9 = vld [vmem:[%s2994_s21 + $0x78] sm:$0xff]  ;;  %v685_v52 = vld [vmem:[%s2972_s18 + $0x758] sm:$0xff]  ;;  %v703_v56 = vld [vmem:[%s2972_s18 + $0x7e8] sm:$0xff] }
 0x112   : > { %2239 = vmatpush3.bf16.msra.mxu1 %v2238_v10  ;;  %2209 = vmatprep.subr.bf16.mxu0 %v2208_v11  ;;  %v2290_v10 = vpack.c.bf16 %v677_v2, %v676_v0  ;;  %v2260_v11 = vpack.c.bf16 %v663_v4, %v662_v3  ;;  %v686_v62 = vld [vmem:[%s2972_s18 + $0x760] sm:$0xff]  ;;  %v2308_v63 = vpack.c.bf16 %v703_v56, %v702_v55  ;;  %v687_v0 = vld [vmem:[%s2972_s18 + $0x768] sm:$0xff]  ;;  %v673_v2 = vld [vmem:[%s2972_s18 + $0x6f8] sm:$0xff]  ;;  %v2689_v55 = vmov (!%p1679_p9), 0.0  }
 0x113   : > { %2241 = vmatprep.subr.bf16.mxu1 %v2240_v15  ;;  %v2292_v15 = vpack.c.bf16 %v695_v6, %v694_v5  ;;  %v704_v3 = vld [vmem:[%s2972_s18 + $0x7f0] sm:$0xff]  ;;  %v705_v4 = vld [vmem:[%s2972_s18 + $0x7f8] sm:$0xff]  ;;  %v2310_v6 = vpack.c.bf16 %v687_v0, %v686_v62  ;;  %vm2318_vm2 = vmpackc.low (!%p1679_p9), %vm1280_vm0, %vm2687_vm1 }
 0x114   : > { %v1365_v56 = vld [vmem:[%s3359_s5 + $0x8] sm:$0xff] (!%p1679_p9)  ;;  %v1368_v62 = vld [vmem:[%s3359_s5 + $0x20] sm:$0xff] (!%p1679_p9) }
 0x115   : > { %2211 = vmatpush3.bf16.msra.mxu0 %v2210_v21  ;;  %v2262_v21 = vpack.c.bf16 %v647_v13, %v646_v12  ;;  %v689_v12 = vld [vmem:[%s2972_s18 + $0x778] sm:$0xff] }
 0x116   : > { %2243 = vmatpush3.bf16.msra.mxu1 %v2242_v22  ;;  %2213 = vmatprep.subr.bf16.mxu0 %v2212_v23  ;;  %v2294_v22 = vpack.c.bf16 %v679_v16, %v678_v14  ;;  %v2264_v23 = vpack.c.bf16 %v665_v18, %v664_v17  ;;  %v448_v16 = vld [vmem:[%s2994_s21 + $0x70] sm:$0xff] }
 0x117   : > { %2245 = vmatprep.subr.bf16.mxu1 %v2244_v27  ;;  %v2296_v27 = vpack.c.bf16 %v697_v20, %v696_v19 }
 0x119   : > { %2215 = vmatpush3.bf16.msra.mxu0 %v2214_v33  ;;  %v2266_v33 = vpack.c.bf16 %v649_v25, %v648_v24 }
 0x11a   : > { %2247 = vmatpush3.bf16.msra.mxu1 %v2246_v34  ;;  %2217 = vmatprep.subr.bf16.mxu0 %v2216_v35  ;;  %v2298_v34 = vpack.c.bf16 %v681_v28, %v680_v26  ;;  %v2268_v35 = vpack.c.bf16 %v667_v30, %v666_v29 }
 0x11b   : > { %2249 = vmatprep.subr.bf16.mxu1 %v2248_v39  ;;  %v2300_v39 = vpack.c.bf16 %v699_v32, %v698_v31 }
 0x11d   : > { %2219 = vmatpush3.bf16.msra.mxu0 %v2218_v45  ;;  %v2270_v45 = vpack.c.bf16 %v651_v37, %v650_v36 }
 0x11e   : > { %2251 = vmatpush3.bf16.msra.mxu1 %v2250_v46  ;;  %2253 = vmatprep.subr.bf16.mxu0 %v2252_v47  ;;  %v2302_v46 = vpack.c.bf16 %v683_v40, %v682_v38  ;;  %v2272_v47 = vpack.c.bf16 %v669_v42, %v668_v41 }
 0x11f   : > { %2285 = vmatprep.subr.bf16.mxu1 %v2284_v51  ;;  %v2304_v51 = vpack.c.bf16 %v701_v44, %v700_v43 }
 0x120   : > { %1051 = vmatmul.mubr.f32.vlgmr.msra.gmra.mrb[4].mxu0 %v442_v57  ;;  %v2274_v57 = vpack.c.bf16 %v653_v49, %v652_v48 }
 0x121   : > { %2255 = vmatpush3.bf16.msra.mxu0 %v2254_v58  ;;  %1121 = vmatmul.mubr.f32.vlgmr.msra.gmra.mrb[4].mxu1 %v444_v59  ;;  %v2306_v58 = vpack.c.bf16 %v685_v52, %v684_v50  ;;  %v2276_v59 = vpack.c.bf16 %v671_v54, %v670_v53  ;;  %v1274_v50 = vld [vmem:[#allocation5] sm:$0xff] (!%p1679_p9)  ;;  %v2686_v52 = vmov (!%p1679_p9), 0.0|0.0   ;;  %v1364_v54 = vld [vmem:[%s3359_s5] sm:$0xff] (!%p1679_p9) }
 0x122   : > { %2287 = vmatpush3.bf16.msra.mxu1 %v2286_v60  ;;  %2257 = vmatprep.subr.bf16.mxu0 %v2256_v61  ;;  %v654_v60 = vld [vmem:[%s2972_s18 + $0x660] sm:$0xff]  ;;  %v655_v61 = vld [vmem:[%s2972_s18 + $0x668] sm:$0xff] }
 0x123   : > { %2289 = vmatprep.subr.bf16.mxu1 %v2288_v1  ;;  %1190 = vmatprep.mubr.f32.mxu0 %v447_v7  ;;  %v672_v1 = vld [vmem:[%s2972_s18 + $0x6f0] sm:$0xff]  ;;  %v2278_v5 = vpack.c.bf16 %v655_v61, %v654_v60  ;;  %v2321_v60 = vpack.c.bf16 (!%p1679_p9), %v1365_v56, %v1364_v54 }
 0x124   : > { %1260 = vmatprep.mubr.f32.mxu1 %v449_v9  ;;  %v2280_v7 = vpack.c.bf16 %v673_v2, %v672_v1  ;;  %v657_v9 = vld [vmem:[%s2972_s18 + $0x678] sm:$0xff]  ;;  %v1370_v1 = vld [vmem:[%s3359_s5 + $0x30] sm:$0xff] (!%p1679_p9)  ;;  %v1371_v2 = vld [vmem:[%s3359_s5 + $0x38] sm:$0xff] (!%p1679_p9) }
 0x125   : > { %2259 = vmatpush3.bf16.msra.mxu0 %v2258_v8  ;;  %v656_v8 = vld [vmem:[%s2972_s18 + $0x670] sm:$0xff] }
 0x126   : > { %2291 = vmatpush3.bf16.msra.mxu1 %v2290_v10  ;;  %2261 = vmatprep.subr.bf16.mxu0 %v2260_v11  ;;  %v2312_v10 = vpack.c.bf16 %v705_v4, %v704_v3  ;;  %v688_v11 = vld [vmem:[%s2972_s18 + $0x770] sm:$0xff]  ;;  %v2282_v13 = vpack.c.bf16 %v657_v9, %v656_v8  ;;  %v2330_v3 = vpack.c.bf16 (!%p1679_p9), %v1371_v2, %v1370_v1  ;;  %v1372_v4 = vld [vmem:[%s3359_s5 + $0x40] sm:$0xff] (!%p1679_p9) }
 0x127   : > { %2293 = vmatprep.subr.bf16.mxu1 %v2292_v15  ;;  %v2314_v14 = vpack.c.bf16 %v689_v12, %v688_v11  ;;  %v446_v15 = vld [vmem:[%s2994_s21 + $0x60] sm:$0xff]  ;;  %v1375_v8 = vld [vmem:[%s3359_s5 + $0x58] sm:$0xff] (!%p1679_p9)  ;;  %v1377_v11 = vld [vmem:[%s3359_s5 + $0x68] sm:$0xff] (!%p1679_p9) }
 0x129   : > { %2263 = vmatpush3.bf16.msra.mxu0 %v2262_v21 }
 0x12a   : > { %2295 = vmatpush3.bf16.msra.mxu1 %v2294_v22  ;;  %2265 = vmatprep.subr.bf16.mxu0 %v2264_v23 }
 0x12b   : > { %2297 = vmatprep.subr.bf16.mxu1 %v2296_v27 }
 0x12d   : > { %2267 = vmatpush3.bf16.msra.mxu0 %v2266_v33 }
 0x12e   : > { %2299 = vmatpush3.bf16.msra.mxu1 %v2298_v34  ;;  %2269 = vmatprep.subr.bf16.mxu0 %v2268_v35 }
 0x12f   : > { %2301 = vmatprep.subr.bf16.mxu1 %v2300_v39 }
 0x131   : > { %2271 = vmatpush3.bf16.msra.mxu0 %v2270_v45 }
 0x132   : > { %2303 = vmatpush3.bf16.msra.mxu1 %v2302_v46  ;;  %2273 = vmatprep.subr.bf16.mxu0 %v2272_v47  ;;  %v433_v47 = vld [vmem:[#allocation2] sm:$0xff] }
 0x133   : > { %2305 = vmatprep.subr.bf16.mxu1 %v2304_v51  ;;  %v1275_v51 = vld [vmem:[#allocation5 + $0x8] sm:$0x1] (!%p1679_p9) }
 0x134   : > { %v2317_v53 = vpack.c.bf16 (!%p1679_p9), %v1275_v51, %v1274_v50 }
 0x135   : > { %2275 = vmatpush3.bf16.msra.mxu0 %v2274_v57  ;;  %v1366_v57 = vld [vmem:[%s3359_s5 + $0x10] sm:$0xff] (!%p1679_p9) }
 0x136   : > { %2307 = vmatpush3.bf16.msra.mxu1 %v2306_v58  ;;  %2277 = vmatprep.subr.bf16.mxu0 %v2276_v59  ;;  %v1367_v58 = vld [vmem:[%s3359_s5 + $0x18] sm:$0xff] (!%p1679_p9)  ;;  %v1273_v59 = vld [vmem:[%s3356_s2] sm:$0xff] (!%p1679_p9) }
 0x137   : > { %2309 = vmatprep.subr.bf16.mxu1 %v2308_v63  ;;  %v2324_v61 = vpack.c.bf16 (!%p1679_p9), %v1367_v58, %v1366_v57  ;;  %v1369_v63 = vld [vmem:[%s3359_s5 + $0x28] sm:$0xff] (!%p1679_p9) }
 0x138   : > { %v2327_v0 = vpack.c.bf16 (!%p1679_p9), %v1369_v63, %v1368_v62 }
 0x139   : > { %2279 = vmatpush3.bf16.msra.mxu0 %v2278_v5  ;;  %v1373_v5 = vld [vmem:[%s3359_s5 + $0x48] sm:$0xff] (!%p1679_p9) }
 0x13a   : > { %2311 = vmatpush3.bf16.msra.mxu1 %v2310_v6  ;;  %2281 = vmatprep.subr.bf16.mxu0 %v2280_v7  ;;  %v2333_v6 = vpack.c.bf16 (!%p1679_p9), %v1373_v5, %v1372_v4  ;;  %v1374_v7 = vld [vmem:[%s3359_s5 + $0x50] sm:$0xff] (!%p1679_p9) }
 0x13b   : > { %2313 = vmatprep.subr.bf16.mxu1 %v2312_v10  ;;  %v2336_v9 = vpack.c.bf16 (!%p1679_p9), %v1375_v8, %v1374_v7  ;;  %v1376_v10 = vld [vmem:[%s3359_s5 + $0x60] sm:$0xff] (!%p1679_p9) }
 0x13c   : > { %v2339_v12 = vpack.c.bf16 (!%p1679_p9), %v1377_v11, %v1376_v10 }
 0x13d   : > { %2283 = vmatpush3.bf16.msra.mxu0 %v2282_v13  ;;  %v1378_v13 = vld [vmem:[%s3359_s5 + $0x70] sm:$0xff] (!%p1679_p9) }
 0x13e   : > { %2315 = vmatpush3.bf16.msra.mxu1 %v2314_v14  ;;  %2316 = vmatprep.subr.bf16.mxu0 (!%p1679_p9), %v2686_v52  ;;  %v1379_v14 = vld [vmem:[%s3359_s5 + $0x78] sm:$0xff] (!%p1679_p9) }
 0x13f   : > { %2320 = vmatprep.subr.bf16.mxu1 (!%p1679_p9), %v2686_v52 }
 0x140   : > { %1191 = vmatmul.mubr.f32.vlgmr.msra.gmra.mrb[6].mxu0 %v446_v15  ;;  %v2342_v15 = vpack.c.bf16 (!%p1679_p9), %v1379_v14, %v1378_v13 }
 0x141   : > { %1261 = vmatmul.mubr.f32.vlgmr.msra.gmra.mrb[6].mxu1 %v448_v16  ;;  %2003 = vmatprep.mubr.msk.f32.mxu0 (!%p1679_p9), %vm2688_vm3, %v2689_v55  ;;  %v1458_v16 = vld [vmem:[#allocation10] sm:$0xff] (!%p1679_p9) }
 0x142   : > { %2038 = vmatprep.mubr.msk.f32.mxu1 (!%p1679_p9), %vm2688_vm3, %v2689_v55  ;;  %2319 = vmatpush3.bf16.msk.msra.mxu0 (!%p1679_p9), %vm2318_vm2, %v2317_v53 }
 0x143   : > { %2344 = vmatprep.subr.bf16.mxu0 (!%p1679_p9), %v2686_v52  ;;  %2322 = vmatpush3.bf16.msra.mxu1 (!%p1679_p9), %v2321_v60 }
 0x144   : > { %2323 = vmatprep.subr.bf16.mxu1 (!%p1679_p9), %v2686_v52 }
 0x147   : > { %2325 = vmatpush3.bf16.msra.mxu1 (!%p1679_p9), %v2324_v61 }
 0x148   : > { %2326 = vmatprep.subr.bf16.mxu1 (!%p1679_p9), %v2686_v52 }
 0x14b   : > { %2328 = vmatpush3.bf16.msra.mxu1 (!%p1679_p9), %v2327_v0 }
 0x14c   : > { %2329 = vmatprep.subr.bf16.mxu1 (!%p1679_p9), %v2686_v52 }
 0x14f   : > { %2331 = vmatpush3.bf16.msra.mxu1 (!%p1679_p9), %v2330_v3 }
 0x150   : > { %2332 = vmatprep.subr.bf16.mxu1 (!%p1679_p9), %v2686_v52 }
 0x153   : > { %2334 = vmatpush3.bf16.msra.mxu1 (!%p1679_p9), %v2333_v6 }
 0x154   : > { %2335 = vmatprep.subr.bf16.mxu1 (!%p1679_p9), %v2686_v52 }
 0x157   : > { %2337 = vmatpush3.bf16.msra.mxu1 (!%p1679_p9), %v2336_v9 }
 0x158   : > { %2338 = vmatprep.subr.bf16.mxu1 (!%p1679_p9), %v2686_v52 }
 0x15b   : > { %2340 = vmatpush3.bf16.msra.mxu1 (!%p1679_p9), %v2339_v12 }
 0x15c   : > { %2341 = vmatprep.subr.bf16.mxu1 (!%p1679_p9), %v2686_v52 }
 0x15f   : > { %2343 = vmatpush3.bf16.msra.mxu1 (!%p1679_p9), %v2342_v15 }
 0x1b3   : > { %v1722_v17 = vpop.f32.mrb[0].mxu0 }
 0x1b4   : > { %v1757_v18 = vpop.f32.mrb[0].mxu1  ;;  %v1723_v19 = vpop.f32.mrb[1].mxu0  ;;  %2004 = vmatmul.mubr.msk.f32.vlgmr.msra.gmra.mrb[0].mxu0 (!%p1679_p9), %vm1276_vm4, %v1273_v59 }
 0x1b5   : > { %v1724_v20 = vadd.f32 %v1723_v19, %v1722_v17  ;;  %v1758_v21 = vpop.f32.mrb[1].mxu1  ;;  %2057 = vmatprep.mubr.msk.f32.mxu0 (!%p1679_p9), %vm2688_vm3, %v2689_v55  ;;  %v1459_v17 = vld [vmem:[#allocation10 + $0x8] sm:$0xff] (!%p1679_p9) }
 0x1b6   : > { %v1759_v22 = vadd.f32 %v1758_v21, %v1757_v18  ;;  %v1460_v18 = vld [vmem:[#allocation10 + $0x10] sm:$0xff] (!%p1679_p9)  ;;  %v2345_v19 = vpack.c.bf16 (!%p1679_p9), %v1459_v17, %v1458_v16 }
 0x1b8   : > { %v843_v23 = vadd.f32 %v1759_v22, %v1724_v20  ;;  %v1461_v20 = vld [vmem:[#allocation10 + $0x18] sm:$0xff] (!%p1679_p9)  ;;  %2346 = vmatpush3.bf16.msra.mxu0 (!%p1679_p9), %v2345_v19  ;;  %v1462_v22 = vld [vmem:[#allocation10 + $0x20] sm:$0xff] (!%p1679_p9) }
 0x1b9   : > { %v2348_v21 = vpack.c.bf16 (!%p1679_p9), %v1461_v20, %v1460_v18  ;;  %2347 = vmatprep.subr.bf16.mxu0 (!%p1679_p9), %v2686_v52 }
 0x1bc   : > { %2349 = vmatpush3.bf16.msra.mxu0 (!%p1679_p9), %v2348_v21 }
 0x1bd   : > { %2350 = vmatprep.subr.bf16.mxu0 (!%p1679_p9), %v2686_v52 }
 0x1d3   : > { %v1792_v24 = vpop.f32.mrb[2].mxu0 }
 0x1d4   : > { %v1793_v25 = vpop.f32.mrb[3].mxu0  ;;  %v1827_v26 = vpop.f32.mrb[2].mxu1 }
 0x1d5   : > { %v1794_v27 = vadd.f32 %v1793_v25, %v1792_v24  ;;  %v1828_v28 = vpop.f32.mrb[3].mxu1 }
 0x1d6   : > { %v1829_v29 = vadd.f32 %v1828_v28, %v1827_v26 }
 0x1d7   : > { %v913_v30 = vadd.f32 %v1794_v27, %v843_v23  ;;  %v1463_v23 = vld [vmem:[#allocation10 + $0x28] sm:$0xff] (!%p1679_p9)  ;;  %v1682_v27 = vld [vmem:[#allocation7] ss:$0 sm:$0xff] (!%p1679_p9) }
 0x1d8   : > { %v2351_v24 = vpack.c.bf16 (!%p1679_p9), %v1463_v23, %v1462_v22 }
 0x1d9   : > { %v983_v31 = vadd.f32 %v1829_v29, %v913_v30 }
 0x1da   : > { %2352 = vmatpush3.bf16.msra.mxu0 (!%p1679_p9), %v2351_v24 }
 0x1db   : > { %2353 = vmatprep.subr.bf16.mxu0 (!%p1679_p9), %v2686_v52 }
 0x1f3   : > { %v1862_v32 = vpop.f32.mrb[4].mxu0 }
 0x1f4   : > { %v1863_v33 = vpop.f32.mrb[5].mxu0  ;;  %v1897_v34 = vpop.f32.mrb[4].mxu1 }
 0x1f5   : > { %v1864_v35 = vadd.f32 %v1863_v33, %v1862_v32  ;;  %v1898_v36 = vpop.f32.mrb[5].mxu1  ;;  %v1464_v32 = vld [vmem:[#allocation10 + $0x30] sm:$0xff] (!%p1679_p9)  ;;  %v1465_v33 = vld [vmem:[#allocation10 + $0x38] sm:$0xff] (!%p1679_p9) }
 0x1f6   : > { %v1899_v37 = vadd.f32 %v1898_v36, %v1897_v34  ;;  %v2354_v34 = vpack.c.bf16 (!%p1679_p9), %v1465_v33, %v1464_v32 }
 0x1f7   : > { %v1053_v38 = vadd.f32 %v1864_v35, %v983_v31  ;;  %v1683_v35 = vld [vmem:[#allocation8] ss:$0 sm:$0xff] (!%p1679_p9) }
 0x1f8   : > { %2355 = vmatpush3.bf16.msra.mxu0 (!%p1679_p9), %v2354_v34 }
 0x1f9   : > { %v1123_v39 = vadd.f32 %v1899_v37, %v1053_v38 }
 0x213   : > { %v1932_v40 = vpop.f32.mrb[6].mxu0 }
 0x214   : > { %v1933_v41 = vpop.f32.mrb[7].mxu0  ;;  %v1967_v42 = vpop.f32.mrb[6].mxu1 }
 0x215   : > { %v1934_v43 = vadd.f32 %v1933_v41, %v1932_v40  ;;  %v1968_v44 = vpop.f32.mrb[7].mxu1  ;;  %v1684_v40 = vld [vmem:[#allocation11] ss:$0 sm:$0xff] (!%p1679_p9) }
 0x216   : > { %v1969_v45 = vadd.f32 %v1968_v44, %v1967_v42 }
 0x217   : > { %v1193_v46 = vadd.f32 %v1934_v43, %v1123_v39  ;;  %1271 = sbr.rel (%p1679_p9) target bundleno = 1112 (0x458), region = 88 }
 0x219   : > { %v1263_v48 = vadd.f32 %v1969_v45, %v1193_v46 }
 0x21b   : > { %v1266_v49 = vadd.f32 %v1263_v48, %v433_v47  ;;  %v1547_v47 = vlaneseq (!%p1679_p9) }
 0x21d   : > { %1267 = vst [vmem:[#allocation2] sm:$0xff] %v1266_v49  ;;  %v1548_v48 = vand.u32 (!%p1679_p9), 127, %v1547_v47 }
 0x21f   : > { %vm1549_vm6 = vcmp.lt.s32.totalorder %v1548_v48, 2 }
 0x224   : > { %v1272_v25 = vld [vmem:[#allocation2] sm:$0xff] }
 0x287   : > { %v1350_v26 = vpop.f32.mrb[0].mxu0 }
 0x288   : > { %v1354_v28 = vadd.f32 %v1350_v26, %v1272_v25  ;;  %v2005_v29 = vpop.f32.mrb[1].mxu0 }
 0x28a   : > { %v1362_v30 = vadd.f32 %v1682_v27, %v1354_v28 }
 0x28c   : > { %v1363_v31 = vmax.f32 %v1362_v30, 0.0 }
 0x28e   : > { %2039 = vmatmul.mubr.f32.vlgmr.msra.gmra.mrb[0].mxu1 %v1363_v31 }
 0x361   : > { %v1453_v36 = vpop.f32.mrb[0].mxu1 }
 0x362   : > { %v1454_v37 = vadd.f32 %v1683_v35, %v1453_v36  ;;  %v2040_v38 = vpop.f32.mrb[1].mxu1 }
 0x364   : > { %v1457_v39 = vmax.f32 %v1454_v37, 0.0 }
 0x366   : > { %2058 = vmatmul.mubr.msk.f32.vlgmr.msra.gmra.mrb[2].mxu0 %vm1473_vm5, %v1457_v39 }
 0x439   : > { %v1543_v41 = vpop.f32.mrb[2].mxu0 }
 0x43a   : > { %v1544_v42 = vadd.f32 %v1684_v40, %v1543_v41  ;;  %v2059_v43 = vpop.f32.mrb[3].mxu0 }
 0x43c   : > { %v1686_v44 = vmul.f32 -1.442695, %v1544_v42 }
 0x43e   : > { %2453 = vpow2.f32 %v1686_v44 }
 0x43f   : > { %2455 = vtanh.f32 %v1544_v42 }
 0x448   : > { %v2454_v45 = vpop.eup %2453 }
 0x449   : > { %v1554_v46 = vadd.f32 1.0, %v2454_v45  ;;  %v2456_v49 = vpop.eup %2455 }
 0x44b   : > { %2457 = vrcp.f32 %v1554_v46 }
 0x455   : > { %v2458_v50 = vpop.eup %2457 }
 0x456   : > { %v1557_v51 = vsel %vm1549_vm6, %v2456_v49, %v2458_v50 }
 0x457   : > { %1558 = vst [vmem:[%s3384_s25] sm:$0xff] %v1557_v51 }
 0x458 PF: > { %p22_p10 = scmp.ge.s32.totalorder %s2905_s27, 6   ;;  %s3385_s30 = smov %s2667_s10 }
 0x459   : > { %s3386_s10 = smov %s2671_s11  ;;  %s3387_s11 = smov %s2916_s29 }
 0x45a   : > { %s3388_s12 = smov %s2905_s27  ;;  %24 = sbr.rel (!%p22_p10) target bundleno = 8 (0x8), region = 123 }
 0x461   :  { %1570 = vsyncpa [#allocation4], 1 }
 0x462   :  { %1572 = vsyncpa [#allocation4 + $0x1], 1 }
 0x463   :  { %1573 = vsyncpa [#allocation6], 1 }
 0x464   :  { %1574 = vsyncpa [#allocation9], 1 }
 0x465   :  { %1575 = vsyncpa [#allocation12], 1 }

</bundles_post_ra>
